<compile_context>
chip_gen: v5e
topology: v5e:2x2
jax: 0.10.0
libtpu: 0.0.40
codegen_flags: <defaults>
</compile_context>

<pallas_src>
import functools
import math

import jax
import jax.numpy as jnp
from jax.experimental import pallas as pl
from jax.experimental.pallas import tpu as pltpu


# ----------------------------------------------------------------------------
# Fused kernel: grid = (batch_tiles, layers).  One invocation = one encoder
# layer applied to a (TB, S, d) batch tile; activation carried in VMEM scratch.
# ----------------------------------------------------------------------------
def fused_encoder_layer_kernel(x_ref, m_ref,
                               wqkv_ref, bqkv_ref, wo_ref, vec_ref,
                               w1_ref, b1_ref, w2_ref,
                               o_ref, act_ref, att_ref, *, H, weights_resident):
    layer = pl.program_id(1)
    li = layer if weights_resident else 0     # resident -> dynamic layer index

    # Load the fresh (bf16) input into the resident activation buffer at layer 0.
    @pl.when(layer == 0)
    def _():
        act_ref[...] = x_ref[...].astype(jnp.float32)

    x = act_ref[...]                              # (TB, S, d) f32
    TB, S, d = x.shape
    dk = d // H
    scale = 1.0 / math.sqrt(dk)

    x2 = x.reshape(TB * S, d)
    xb = x2.astype(jnp.bfloat16)

    # --- fused Q/K/V projection: one wide matmul (M = TB*S, N = 3d) -----------
    qkv = jnp.dot(xb, wqkv_ref[li], preferred_element_type=jnp.float32) + bqkv_ref[li]
    q3 = qkv[:, 0 * d:1 * d].reshape(TB, S, d).astype(jnp.bfloat16)
    k3 = qkv[:, 1 * d:2 * d].reshape(TB, S, d).astype(jnp.bfloat16)
    v3 = qkv[:, 2 * d:3 * d].reshape(TB, S, d).astype(jnp.bfloat16)

    # Additive key-padding mask, kept at (TB, 1, S); broadcast happens in the add.
    m = m_ref[...]                                # (TB, 1, S) f32, 1.0 = padded
    neg = jnp.where(m > 0.5, jnp.float32(-1e30), jnp.float32(0.0))

    # Packed per-layer vectors: rows = [bo, g1, be1, b2, g2, be2], each (1, d).
    vecs = vec_ref[li]                            # (6, d) f32
    bo, g1, be1 = vecs[0:1, :], vecs[1:2, :], vecs[2:3, :]
    b2, g2, be2 = vecs[3:4, :], vecs[4:5, :], vecs[5:6, :]

    # --- multi-head self attention (batched over TB; static loop over heads,
    #     dk <= 64 contraction accepted — attention FLOPs << FFN at M2 scale) --
    for h in range(H):
        lo = h * dk
        qs = q3[:, :, lo:lo + dk]
        ks = k3[:, :, lo:lo + dk]
        vs = v3[:, :, lo:lo + dk]
        logits = jnp.einsum('bqd,bkd->bqk', qs, ks,
                            preferred_element_type=jnp.float32) * scale + neg
        lmax = jnp.max(logits, axis=-1, keepdims=True)
        p = jnp.exp(logits - lmax)
        denom = jnp.sum(p, axis=-1, keepdims=True)
        p = p * pl.reciprocal(denom, approx=True)
        # write this head's output straight into its lane slice (no concat copy)
        att_ref[:, :, lo:lo + dk] = jnp.einsum('bqk,bkd->bqd',
                                               p.astype(jnp.bfloat16), vs,
                                               preferred_element_type=jnp.float32)

    # Single full-width (contraction = d) output projection.
    att = att_ref[...].reshape(TB * S, d).astype(jnp.bfloat16)
    att = jnp.dot(att, wo_ref[li], preferred_element_type=jnp.float32) + bo

    # residual + LayerNorm (eps = 1e-5, torch default) in f32
    y = x2 + att
    mu = jnp.mean(y, axis=-1, keepdims=True)
    var = jnp.mean((y - mu) ** 2, axis=-1, keepdims=True)
    y = (y - mu) * jax.lax.rsqrt(var + 1e-5) * g1 + be1

    # --- position-wise feed forward (wide bf16 matmuls, f32 accumulation) -----
    h1 = jnp.dot(y.astype(jnp.bfloat16), w1_ref[li],
                 preferred_element_type=jnp.float32) + b1_ref[li]
    h1 = jnp.maximum(h1, 0.0).astype(jnp.bfloat16)     # bound f32 live range
    h2 = jnp.dot(h1, w2_ref[li], preferred_element_type=jnp.float32) + b2

    z = y + h2
    mu2 = jnp.mean(z, axis=-1, keepdims=True)
    var2 = jnp.mean((z - mu2) ** 2, axis=-1, keepdims=True)
    z = (z - mu2) * jax.lax.rsqrt(var2 + 1e-5) * g2 + be2

    z3 = z.reshape(TB, S, d)
    act_ref[...] = z3                              # carry to next layer step
    o_ref[...] = z3.reshape(TB, 1, S, d)           # this layer's output block


# ----------------------------------------------------------------------------
# Tiling / VMEM-budget helpers.
# ----------------------------------------------------------------------------
def _vmem_capacity_bytes():
    try:
        return int(pltpu.get_tpu_info().vmem_capacity_bytes)
    except Exception:
        return 64 * 1024 * 1024        # conservative (v7x per-TensorCore)


def _choose_batch_tile(B, S, target_rows=1024):
    """TB so TB*S ~ target_rows, never wider than B, and nb >= 2 when B > 1."""
    TB = max(1, target_rows // S)
    TB = min(TB, B)
    if B > 1 and TB >= B:              # keep >=2 grid steps for megacore (v7x)
        TB = max(1, pl.cdiv(B, 2))
    return TB


def _stack_weights(params):
    """Per-layer weights stacked on a leading L axis; MXU operands -> bf16."""
    wqkv = jnp.stack([jnp.concatenate([p['wq'], p['wk'], p['wv']], axis=1)
                      for p in params]).astype(jnp.bfloat16)            # (L, d, 3d)
    bqkv = jnp.stack([jnp.concatenate([p['bq'], p['bk'], p['bv']], axis=1)
                      for p in params])                                 # (L, 1, 3d)
    wo = jnp.stack([p['wo'] for p in params]).astype(jnp.bfloat16)      # (L, d, d)
    vecs = jnp.stack([jnp.concatenate([p['bo'], p['g1'], p['be1'],
                                       p['b2'], p['g2'], p['be2']], axis=0)
                      for p in params])                                 # (L, 6, d)
    w1 = jnp.stack([p['w1'] for p in params]).astype(jnp.bfloat16)      # (L, d, dff)
    b1 = jnp.stack([p['b1'] for p in params])                           # (L, 1, dff)
    w2 = jnp.stack([p['w2'] for p in params]).astype(jnp.bfloat16)      # (L, dff, d)
    return [wqkv, bqkv, wo, vecs, w1, b1, w2]


def _weight_spec(w, resident):
    if resident:
        # Full-L block, constant index -> DMA'd once per kernel, stays in VMEM.
        nd = w.ndim
        return pl.BlockSpec(w.shape, lambda b, l, _nd=nd: (0,) * _nd)
    nrest = w.ndim - 1
    return pl.BlockSpec((1,) + w.shape[1:],
                        lambda b, l, _nr=nrest: (l,) + (0,) * _nr)


# ----------------------------------------------------------------------------
# MultiLevelEncoder forward (glue in plain JAX, hot path in one fused kernel).
# ----------------------------------------------------------------------------
def multi_level_encoder(views, params, H, block_b=None):
    n_views = len(views)
    Nb, S, d = views[0].shape
    B = n_views * Nb
    L = len(params)
    d_ff = params[0]['w1'].shape[1]

    stacked = jnp.stack(views).reshape(B, S, d).astype(jnp.float32)     # (B, S, d)

    TB = block_b if block_b is not None else _choose_batch_tile(B, S)
    nb = pl.cdiv(B, TB)
    B_pad = nb * TB
    if B_pad != B:       # pad with fully-masked (all-zero) rows, sliced off later
        stacked_pad = jnp.concatenate(
            [stacked, jnp.zeros((B_pad - B, S, d), jnp.float32)], axis=0)
    else:
        stacked_pad = stacked

    mask_bool_pad = jnp.sum(jnp.abs(stacked_pad), axis=-1) == 0         # (B_pad, S)
    mask3 = mask_bool_pad.astype(jnp.float32)[:, None, :]               # (B_pad,1,S)
    x_in = stacked_pad.astype(jnp.bfloat16)                             # halve input DMA

    stacked_w = _stack_weights(params)

    # Generation-aware VMEM budget + decide whether all-layer weights stay resident.
    vmem_cap = _vmem_capacity_bytes()
    vmem_limit = min(int(vmem_cap * 0.6), 100 * 1024 * 1024)
    weight_bytes = sum(int(w.size) * w.dtype.itemsize for w in stacked_w)
    io_bytes = 2 * (TB * S * d * 2) + 2 * (TB * S * 4) + 2 * (TB * S * d * 4)
    scr_bytes = 2 * (TB * S * d * 4)                      # act + att scratch
    interm_bytes = TB * S * (6 * d + d_ff) * 4 + 2 * (TB * S * S * 4)
    weights_resident = (2 * weight_bytes + io_bytes + scr_bytes + interm_bytes
                        + (4 << 20)) <= vmem_limit

    in_specs = ([pl.BlockSpec((TB, S, d), lambda b, l: (b, 0, 0)),
                 pl.BlockSpec((TB, 1, S), lambda b, l: (b, 0, 0))]
                + [_weight_spec(w, weights_resident) for w in stacked_w])

    out = pl.pallas_call(
        functools.partial(fused_encoder_layer_kernel, H=H,
                          weights_resident=weights_resident),
        grid=(nb, L),
        in_specs=in_specs,
        out_specs=pl.BlockSpec((TB, 1, S, d), lambda b, l: (b, l, 0, 0)),
        out_shape=jax.ShapeDtypeStruct((B_pad, L, S, d), jnp.float32),
        scratch_shapes=[pltpu.VMEM((TB, S, d), jnp.float32),   # activation carry
                        pltpu.VMEM((TB, S, d), jnp.float32)],  # head outputs
        compiler_params=pltpu.CompilerParams(
            dimension_semantics=("parallel", "arbitrary"),
            vmem_limit_bytes=vmem_limit,
        ),
    )(x_in, mask3, *stacked_w)

    outs = out[:B].reshape(n_views, Nb, L, S, d)
    masks = mask_bool_pad[:B].reshape(n_views, Nb, 1, 1, S)
    return [o for o in outs], [m for m in masks]


# ----------------------------------------------------------------------------
# Deterministic parameter init (shapes follow EncoderLayer.__init__).
# ----------------------------------------------------------------------------
def init_params(key, n_layers, d, d_ff):
    def lin(k, fin, fout):
        lim = 1.0 / math.sqrt(fin)
        return jax.random.uniform(k, (fin, fout), jnp.float32, -lim, lim)

    params = []
    for _ in range(n_layers):
        key, *ks = jax.random.split(key, 13)
        p = dict(
            wq=lin(ks[0], d, d),    bq=lin(ks[1], 1, d),
            wk=lin(ks[2], d, d),    bk=lin(ks[3], 1, d),
            wv=lin(ks[4], d, d),    bv=lin(ks[5], 1, d),
            wo=lin(ks[6], d, d),    bo=lin(ks[7], 1, d),
            g1=jnp.ones((1, d), jnp.float32),  be1=jnp.zeros((1, d), jnp.float32),
            w1=lin(ks[8], d, d_ff), b1=lin(ks[9], 1, d_ff),
            w2=lin(ks[10], d_ff, d), b2=lin(ks[11], 1, d),
            g2=jnp.ones((1, d), jnp.float32),  be2=jnp.zeros((1, d), jnp.float32),
        )
        params.append(p)
    return params


# ----------------------------------------------------------------------------
# Pure-JAX f32 reference (module semantics) for validation.
# ----------------------------------------------------------------------------
def ref_layer(x, mask_bool, p, H):
    B, S, d = x.shape
    dk = d // H

    def ln(t, g, b):
        mu = t.mean(-1, keepdims=True)
        var = ((t - mu) ** 2).mean(-1, keepdims=True)
        return (t - mu) / jnp.sqrt(var + 1e-5) * g + b

    q = (x @ p['wq'] + p['bq']).reshape(B, S, H, dk).transpose(0, 2, 1, 3)
    k = (x @ p['wk'] + p['bk']).reshape(B, S, H, dk).transpose(0, 2, 1, 3)
    v = (x @ p['wv'] + p['bv']).reshape(B, S, H, dk).transpose(0, 2, 1, 3)
    att = jnp.einsum('bhqd,bhkd->bhqk', q, k) / math.sqrt(dk)
    att = jnp.where(mask_bool[:, None, None, :], -jnp.inf, att)
    att = jax.nn.softmax(att, axis=-1)
    o = jnp.einsum('bhqk,bhkd->bhqd', att, v).transpose(0, 2, 1, 3).reshape(B, S, d)
    o = o @ p['wo'] + p['bo']
    y = ln(x + o, p['g1'], p['be1'])
    ff = jnp.maximum(y @ p['w1'] + p['b1'], 0.0) @ p['w2'] + p['b2']
    return ln(y + ff, p['g2'], p['be2'])


if __name__ == "__main__":
    n_views, Nb, S, d, H, d_ff, n_layers = 2, 2, 8, 32, 4, 64, 2

    key = jax.random.PRNGKey(0)
    kv, kp = jax.random.split(key)
    vkeys = jax.random.split(kv, n_views)
    views = []
    for i in range(n_views):
        v = jax.random.normal(vkeys[i], (Nb, S, d), jnp.float32)
        if i == 1:
            v = v.at[:, -2:, :].set(0.0)   # padded positions -> exercise the mask
        views.append(v)

    params = init_params(kp, n_layers, d, d_ff)

    outs, masks = multi_level_encoder(views, params, H)
    got = jnp.stack(outs)                         # (n_views, Nb, L, S, d)
    got_masks = jnp.stack(masks)                  # (n_views, Nb, 1, 1, S)
    jax.block_until_ready(got)

    # reference check (f32 math; kernel uses bf16 input + MXU operands -> loose tol)
    stacked = jnp.stack(views).reshape(n_views * Nb, S, d)
    mask_bool = jnp.sum(jnp.abs(stacked), axis=-1) == 0
    out = stacked
    ref_outs = []
    for p in params:
        out = ref_layer(out, mask_bool, p, H)
        ref_outs.append(out)
    ref = jnp.stack(ref_outs, axis=1).reshape(n_views, Nb, n_layers, S, d)

    assert jnp.allclose(got, ref, atol=3e-2, rtol=3e-2), "mismatch vs reference"
    assert jnp.array_equal(got_masks, mask_bool.reshape(n_views, Nb, 1, 1, S))
    print("KERNEL_OK")
</pallas_src>

<mosaic_0001>
module attributes {stable_mosaic.version = 11 : i64} {
  func.func @fused_encoder_layer_kernel(%arg0: i32, %arg1: i32, %arg2: memref<2x8x32xbf16, #tpu.memory_space<vmem>>, %arg3: memref<2x1x8xf32, #tpu.memory_space<vmem>>, %arg4: memref<2x32x96xbf16, #tpu.memory_space<vmem>>, %arg5: memref<2x1x96xf32, #tpu.memory_space<vmem>>, %arg6: memref<2x32x32xbf16, #tpu.memory_space<vmem>>, %arg7: memref<2x6x32xf32, #tpu.memory_space<vmem>>, %arg8: memref<2x32x64xbf16, #tpu.memory_space<vmem>>, %arg9: memref<2x1x64xf32, #tpu.memory_space<vmem>>, %arg10: memref<2x64x32xbf16, #tpu.memory_space<vmem>>, %arg11: memref<2x1x8x32xf32, #tpu.memory_space<vmem>>, %arg12: memref<2x8x32xf32, #tpu.memory_space<vmem>>, %arg13: memref<2x8x32xf32, #tpu.memory_space<vmem>>) attributes {dimension_semantics = [#tpu.dimension_semantics<parallel>, #tpu.dimension_semantics<arbitrary>], iteration_bounds = array<i64: 2, 2>, scalar_prefetch = 0 : i64, scratch_operands = 2 : i64, tpu.core_type = #tpu.core_type<tc>, window_params = [{transform_indices = @transform_0, window_bounds = array<i64: 2, 8, 32>}, {transform_indices = @transform_1, window_bounds = array<i64: 2, 1, 8>}, {pipeline_mode = #tpu.pipeline_mode<synchronous>, transform_indices = @transform_2, window_bounds = array<i64: 2, 32, 96>}, {pipeline_mode = #tpu.pipeline_mode<synchronous>, transform_indices = @transform_3, window_bounds = array<i64: 2, 1, 96>}, {pipeline_mode = #tpu.pipeline_mode<synchronous>, transform_indices = @transform_4, window_bounds = array<i64: 2, 32, 32>}, {pipeline_mode = #tpu.pipeline_mode<synchronous>, transform_indices = @transform_5, window_bounds = array<i64: 2, 6, 32>}, {pipeline_mode = #tpu.pipeline_mode<synchronous>, transform_indices = @transform_6, window_bounds = array<i64: 2, 32, 64>}, {pipeline_mode = #tpu.pipeline_mode<synchronous>, transform_indices = @transform_7, window_bounds = array<i64: 2, 1, 64>}, {pipeline_mode = #tpu.pipeline_mode<synchronous>, transform_indices = @transform_8, window_bounds = array<i64: 2, 64, 32>}, {transform_indices = @transform_9, window_bounds = array<i64: 2, 1, 8, 32>}]} {
    %c0_i32 = arith.constant 0 : i32
    %0 = arith.cmpi eq, %arg1, %c0_i32 : i32
    %1 = arith.extui %0 : i1 to i32
    %c0_i32_0 = arith.constant 0 : i32
    %2 = arith.cmpi ne, %1, %c0_i32_0 : i32
    scf.if %2 {
      %c0_76 = arith.constant 0 : index
      %c0_77 = arith.constant 0 : index
      %c0_78 = arith.constant 0 : index
      %201 = vector.load %arg2[%c0_76, %c0_77, %c0_78] : memref<2x8x32xbf16, #tpu.memory_space<vmem>>, vector<2x8x32xbf16>
      %202 = arith.extf %201 : vector<2x8x32xbf16> to vector<2x8x32xf32>
      %c0_79 = arith.constant 0 : index
      %c0_80 = arith.constant 0 : index
      %c0_81 = arith.constant 0 : index
      %203 = vector.load %arg12[%c0_79, %c0_80, %c0_81] : memref<2x8x32xf32, #tpu.memory_space<vmem>>, vector<2x8x32xf32>
      tpu.vector_store %arg12[%c0_79, %c0_80, %c0_81], %202 {strides = array<i32>} : memref<2x8x32xf32, #tpu.memory_space<vmem>>, vector<2x8x32xf32>,
    } else {
    }
    %c0 = arith.constant 0 : index
    %c0_1 = arith.constant 0 : index
    %c0_2 = arith.constant 0 : index
    %3 = vector.load %arg12[%c0, %c0_1, %c0_2] : memref<2x8x32xf32, #tpu.memory_space<vmem>>, vector<2x8x32xf32>
    %4 = vector.shape_cast %3 : vector<2x8x32xf32> to vector<16x32xf32>
    %5 = arith.truncf %4 : vector<16x32xf32> to vector<16x32xbf16>
    %6 = arith.index_cast %arg1 : i32 to index
    %c0_3 = arith.constant 0 : index
    %c0_4 = arith.constant 0 : index
    %7 = vector.load %arg4[%6, %c0_3, %c0_4] : memref<2x32x96xbf16, #tpu.memory_space<vmem>>, vector<1x32x96xbf16>
    %8 = vector.shape_cast %7 : vector<1x32x96xbf16> to vector<32x96xbf16>
    %cst = arith.constant dense<0.000000e+00> : vector<16x96xf32>
    %9 = tpu.matmul %5, %8, %cst {dimension_numbers = #tpu.dot_dimension_numbers<[1], [0], [0], [1], [0, 0, 1, 1], [], []>} : vector<16x32xbf16>, vector<32x96xbf16>, vector<16x96xf32> -> vector<16x96xf32>
    %10 = arith.index_cast %arg1 : i32 to index
    %c0_5 = arith.constant 0 : index
    %c0_6 = arith.constant 0 : index
    %11 = vector.load %arg5[%10, %c0_5, %c0_6] : memref<2x1x96xf32, #tpu.memory_space<vmem>>, vector<1x1x96xf32>
    %12 = vector.shape_cast %11 : vector<1x1x96xf32> to vector<1x96xf32>
    %13 = vector.broadcast %12 : vector<1x96xf32> to vector<16x96xf32>
    %14 = arith.addf %9, %13 : vector<16x96xf32>
    %15 = vector.extract_strided_slice %14 {offsets = [0, 0], sizes = [16, 32], strides = [1, 1]} : vector<16x96xf32> to vector<16x32xf32>
    %16 = vector.shape_cast %15 : vector<16x32xf32> to vector<2x8x32xf32>
    %17 = arith.truncf %16 : vector<2x8x32xf32> to vector<2x8x32xbf16>
    %18 = vector.extract_strided_slice %14 {offsets = [0, 32], sizes = [16, 32], strides = [1, 1]} : vector<16x96xf32> to vector<16x32xf32>
    %19 = vector.shape_cast %18 : vector<16x32xf32> to vector<2x8x32xf32>
    %20 = arith.truncf %19 : vector<2x8x32xf32> to vector<2x8x32xbf16>
    %21 = vector.extract_strided_slice %14 {offsets = [0, 64], sizes = [16, 32], strides = [1, 1]} : vector<16x96xf32> to vector<16x32xf32>
    %22 = vector.shape_cast %21 : vector<16x32xf32> to vector<2x8x32xf32>
    %23 = arith.truncf %22 : vector<2x8x32xf32> to vector<2x8x32xbf16>
    %c0_7 = arith.constant 0 : index
    %c0_8 = arith.constant 0 : index
    %c0_9 = arith.constant 0 : index
    %24 = vector.load %arg3[%c0_7, %c0_8, %c0_9] : memref<2x1x8xf32, #tpu.memory_space<vmem>>, vector<2x1x8xf32>
    %cst_10 = arith.constant 5.000000e-01 : f32
    %25 = vector.broadcast %cst_10 : f32 to vector<2x1x8xf32>
    %26 = arith.cmpf ogt, %24, %25 : vector<2x1x8xf32>
    %cst_11 = arith.constant -1.000000e+30 : f32
    %cst_12 = arith.constant 0.000000e+00 : f32
    %27 = vector.broadcast %cst_11 : f32 to vector<2x1x8xf32>
    %28 = vector.broadcast %cst_12 : f32 to vector<2x1x8xf32>
    %29 = arith.select %26, %27, %28 : vector<2x1x8xi1>, vector<2x1x8xf32>
    %30 = arith.index_cast %arg1 : i32 to index
    %c0_13 = arith.constant 0 : index
    %c0_14 = arith.constant 0 : index
    %31 = vector.load %arg7[%30, %c0_13, %c0_14] : memref<2x6x32xf32, #tpu.memory_space<vmem>>, vector<1x6x32xf32>
    %32 = vector.shape_cast %31 : vector<1x6x32xf32> to vector<6x32xf32>
    %33 = vector.extract_strided_slice %32 {offsets = [0, 0], sizes = [1, 32], strides = [1, 1]} : vector<6x32xf32> to vector<1x32xf32>
    %34 = vector.extract_strided_slice %32 {offsets = [1, 0], sizes = [1, 32], strides = [1, 1]} : vector<6x32xf32> to vector<1x32xf32>
    %35 = vector.extract_strided_slice %32 {offsets = [2, 0], sizes = [1, 32], strides = [1, 1]} : vector<6x32xf32> to vector<1x32xf32>
    %36 = vector.extract_strided_slice %32 {offsets = [3, 0], sizes = [1, 32], strides = [1, 1]} : vector<6x32xf32> to vector<1x32xf32>
    %37 = vector.extract_strided_slice %32 {offsets = [4, 0], sizes = [1, 32], strides = [1, 1]} : vector<6x32xf32> to vector<1x32xf32>
    %38 = vector.extract_strided_slice %32 {offsets = [5, 0], sizes = [1, 32], strides = [1, 1]} : vector<6x32xf32> to vector<1x32xf32>
    %39 = vector.extract_strided_slice %17 {offsets = [0, 0, 0], sizes = [2, 8, 8], strides = [1, 1, 1]} : vector<2x8x32xbf16> to vector<2x8x8xbf16>
    %40 = vector.extract_strided_slice %20 {offsets = [0, 0, 0], sizes = [2, 8, 8], strides = [1, 1, 1]} : vector<2x8x32xbf16> to vector<2x8x8xbf16>
    %41 = vector.extract_strided_slice %23 {offsets = [0, 0, 0], sizes = [2, 8, 8], strides = [1, 1, 1]} : vector<2x8x32xbf16> to vector<2x8x8xbf16>
    "tpu.trace_start"() <{level = 10 : i32, message = "bqd,bkd->bqk"}> : () -> ()
    %cst_15 = arith.constant dense<0.000000e+00> : vector<2x8x8xf32>
    %42 = tpu.matmul %39, %40, %cst_15 {dimension_numbers = #tpu.dot_dimension_numbers<[2], [2], [1], [1], [0, 0, 0, 1, 1, 1], [0], [0]>} : vector<2x8x8xbf16>, vector<2x8x8xbf16>, vector<2x8x8xf32> -> vector<2x8x8xf32>
    "tpu.trace_stop"() : () -> ()
    %cst_16 = arith.constant 0.353553385 : f32
    %43 = vector.broadcast %cst_16 : f32 to vector<2x8x8xf32>
    %44 = arith.mulf %42, %43 : vector<2x8x8xf32>
    %45 = vector.broadcast %29 : vector<2x1x8xf32> to vector<2x8x8xf32>
    %46 = arith.addf %44, %45 : vector<2x8x8xf32>
    %cst_17 = arith.constant dense<0xFF800000> : vector<2x8xf32>
    %47 = vector.multi_reduction <maximumf>, %46, %cst_17 [2] : vector<2x8x8xf32> to vector<2x8xf32>
    %48 = vector.shape_cast %47 : vector<2x8xf32> to vector<2x8x1xf32>
    %49 = vector.broadcast %48 : vector<2x8x1xf32> to vector<2x8x8xf32>
    %50 = arith.subf %46, %49 : vector<2x8x8xf32>
    %51 = math.exp %50 : vector<2x8x8xf32>
    %cst_18 = arith.constant dense<0.000000e+00> : vector<2x8xf32>
    %52 = vector.multi_reduction <add>, %51, %cst_18 [2] : vector<2x8x8xf32> to vector<2x8xf32>
    %53 = vector.shape_cast %52 : vector<2x8xf32> to vector<2x8x1xf32>
    %54 = tpu.reciprocal %53 {approx = true} : vector<2x8x1xf32> -> vector<2x8x1xf32>
    %55 = vector.broadcast %54 : vector<2x8x1xf32> to vector<2x8x8xf32>
    %56 = arith.mulf %51, %55 : vector<2x8x8xf32>
    %57 = arith.truncf %56 : vector<2x8x8xf32> to vector<2x8x8xbf16>
    "tpu.trace_start"() <{level = 10 : i32, message = "bqk,bkd->bqd"}> : () -> ()
    %cst_19 = arith.constant dense<0.000000e+00> : vector<2x8x8xf32>
    %58 = tpu.matmul %57, %41, %cst_19 {dimension_numbers = #tpu.dot_dimension_numbers<[2], [1], [1], [2], [0, 0, 0, 1, 1, 2], [0], [0]>} : vector<2x8x8xbf16>, vector<2x8x8xbf16>, vector<2x8x8xf32> -> vector<2x8x8xf32>
    "tpu.trace_stop"() : () -> ()
    %c0_20 = arith.constant 0 : index
    %c0_21 = arith.constant 0 : index
    %c0_22 = arith.constant 0 : index
    %59 = vector.load %arg13[%c0_20, %c0_21, %c0_22] : memref<2x8x32xf32, #tpu.memory_space<vmem>>, vector<2x8x8xf32>
    tpu.vector_store %arg13[%c0_20, %c0_21, %c0_22], %58 {strides = array<i32>} : memref<2x8x32xf32, #tpu.memory_space<vmem>>, vector<2x8x8xf32>,
    %60 = vector.extract_strided_slice %17 {offsets = [0, 0, 8], sizes = [2, 8, 8], strides = [1, 1, 1]} : vector<2x8x32xbf16> to vector<2x8x8xbf16>
    %61 = vector.extract_strided_slice %20 {offsets = [0, 0, 8], sizes = [2, 8, 8], strides = [1, 1, 1]} : vector<2x8x32xbf16> to vector<2x8x8xbf16>
    %62 = vector.extract_strided_slice %23 {offsets = [0, 0, 8], sizes = [2, 8, 8], strides = [1, 1, 1]} : vector<2x8x32xbf16> to vector<2x8x8xbf16>
    "tpu.trace_start"() <{level = 10 : i32, message = "bqd,bkd->bqk"}> : () -> ()
    %cst_23 = arith.constant dense<0.000000e+00> : vector<2x8x8xf32>
    %63 = tpu.matmul %60, %61, %cst_23 {dimension_numbers = #tpu.dot_dimension_numbers<[2], [2], [1], [1], [0, 0, 0, 1, 1, 1], [0], [0]>} : vector<2x8x8xbf16>, vector<2x8x8xbf16>, vector<2x8x8xf32> -> vector<2x8x8xf32>
    "tpu.trace_stop"() : () -> ()
    %cst_24 = arith.constant 0.353553385 : f32
    %64 = vector.broadcast %cst_24 : f32 to vector<2x8x8xf32>
    %65 = arith.mulf %63, %64 : vector<2x8x8xf32>
    %66 = vector.broadcast %29 : vector<2x1x8xf32> to vector<2x8x8xf32>
    %67 = arith.addf %65, %66 : vector<2x8x8xf32>
    %cst_25 = arith.constant dense<0xFF800000> : vector<2x8xf32>
    %68 = vector.multi_reduction <maximumf>, %67, %cst_25 [2] : vector<2x8x8xf32> to vector<2x8xf32>
    %69 = vector.shape_cast %68 : vector<2x8xf32> to vector<2x8x1xf32>
    %70 = vector.broadcast %69 : vector<2x8x1xf32> to vector<2x8x8xf32>
    %71 = arith.subf %67, %70 : vector<2x8x8xf32>
    %72 = math.exp %71 : vector<2x8x8xf32>
    %cst_26 = arith.constant dense<0.000000e+00> : vector<2x8xf32>
    %73 = vector.multi_reduction <add>, %72, %cst_26 [2] : vector<2x8x8xf32> to vector<2x8xf32>
    %74 = vector.shape_cast %73 : vector<2x8xf32> to vector<2x8x1xf32>
    %75 = tpu.reciprocal %74 {approx = true} : vector<2x8x1xf32> -> vector<2x8x1xf32>
    %76 = vector.broadcast %75 : vector<2x8x1xf32> to vector<2x8x8xf32>
    %77 = arith.mulf %72, %76 : vector<2x8x8xf32>
    %78 = arith.truncf %77 : vector<2x8x8xf32> to vector<2x8x8xbf16>
    "tpu.trace_start"() <{level = 10 : i32, message = "bqk,bkd->bqd"}> : () -> ()
    %cst_27 = arith.constant dense<0.000000e+00> : vector<2x8x8xf32>
    %79 = tpu.matmul %78, %62, %cst_27 {dimension_numbers = #tpu.dot_dimension_numbers<[2], [1], [1], [2], [0, 0, 0, 1, 1, 2], [0], [0]>} : vector<2x8x8xbf16>, vector<2x8x8xbf16>, vector<2x8x8xf32> -> vector<2x8x8xf32>
    "tpu.trace_stop"() : () -> ()
    %c0_28 = arith.constant 0 : index
    %c0_29 = arith.constant 0 : index
    %c8 = arith.constant 8 : index
    %80 = vector.load %arg13[%c0_28, %c0_29, %c8] : memref<2x8x32xf32, #tpu.memory_space<vmem>>, vector<2x8x8xf32>
    tpu.vector_store %arg13[%c0_28, %c0_29, %c8], %79 {strides = array<i32>} : memref<2x8x32xf32, #tpu.memory_space<vmem>>, vector<2x8x8xf32>,
    %81 = vector.extract_strided_slice %17 {offsets = [0, 0, 16], sizes = [2, 8, 8], strides = [1, 1, 1]} : vector<2x8x32xbf16> to vector<2x8x8xbf16>
    %82 = vector.extract_strided_slice %20 {offsets = [0, 0, 16], sizes = [2, 8, 8], strides = [1, 1, 1]} : vector<2x8x32xbf16> to vector<2x8x8xbf16>
    %83 = vector.extract_strided_slice %23 {offsets = [0, 0, 16], sizes = [2, 8, 8], strides = [1, 1, 1]} : vector<2x8x32xbf16> to vector<2x8x8xbf16>
    "tpu.trace_start"() <{level = 10 : i32, message = "bqd,bkd->bqk"}> : () -> ()
    %cst_30 = arith.constant dense<0.000000e+00> : vector<2x8x8xf32>
    %84 = tpu.matmul %81, %82, %cst_30 {dimension_numbers = #tpu.dot_dimension_numbers<[2], [2], [1], [1], [0, 0, 0, 1, 1, 1], [0], [0]>} : vector<2x8x8xbf16>, vector<2x8x8xbf16>, vector<2x8x8xf32> -> vector<2x8x8xf32>
    "tpu.trace_stop"() : () -> ()
    %cst_31 = arith.constant 0.353553385 : f32
    %85 = vector.broadcast %cst_31 : f32 to vector<2x8x8xf32>
    %86 = arith.mulf %84, %85 : vector<2x8x8xf32>
    %87 = vector.broadcast %29 : vector<2x1x8xf32> to vector<2x8x8xf32>
    %88 = arith.addf %86, %87 : vector<2x8x8xf32>
    %cst_32 = arith.constant dense<0xFF800000> : vector<2x8xf32>
    %89 = vector.multi_reduction <maximumf>, %88, %cst_32 [2] : vector<2x8x8xf32> to vector<2x8xf32>
    %90 = vector.shape_cast %89 : vector<2x8xf32> to vector<2x8x1xf32>
    %91 = vector.broadcast %90 : vector<2x8x1xf32> to vector<2x8x8xf32>
    %92 = arith.subf %88, %91 : vector<2x8x8xf32>
    %93 = math.exp %92 : vector<2x8x8xf32>
    %cst_33 = arith.constant dense<0.000000e+00> : vector<2x8xf32>
    %94 = vector.multi_reduction <add>, %93, %cst_33 [2] : vector<2x8x8xf32> to vector<2x8xf32>
    %95 = vector.shape_cast %94 : vector<2x8xf32> to vector<2x8x1xf32>
    %96 = tpu.reciprocal %95 {approx = true} : vector<2x8x1xf32> -> vector<2x8x1xf32>
    %97 = vector.broadcast %96 : vector<2x8x1xf32> to vector<2x8x8xf32>
    %98 = arith.mulf %93, %97 : vector<2x8x8xf32>
    %99 = arith.truncf %98 : vector<2x8x8xf32> to vector<2x8x8xbf16>
    "tpu.trace_start"() <{level = 10 : i32, message = "bqk,bkd->bqd"}> : () -> ()
    %cst_34 = arith.constant dense<0.000000e+00> : vector<2x8x8xf32>
    %100 = tpu.matmul %99, %83, %cst_34 {dimension_numbers = #tpu.dot_dimension_numbers<[2], [1], [1], [2], [0, 0, 0, 1, 1, 2], [0], [0]>} : vector<2x8x8xbf16>, vector<2x8x8xbf16>, vector<2x8x8xf32> -> vector<2x8x8xf32>
    "tpu.trace_stop"() : () -> ()
    %c0_35 = arith.constant 0 : index
    %c0_36 = arith.constant 0 : index
    %c16 = arith.constant 16 : index
    %101 = vector.load %arg13[%c0_35, %c0_36, %c16] : memref<2x8x32xf32, #tpu.memory_space<vmem>>, vector<2x8x8xf32>
    tpu.vector_store %arg13[%c0_35, %c0_36, %c16], %100 {strides = array<i32>} : memref<2x8x32xf32, #tpu.memory_space<vmem>>, vector<2x8x8xf32>,
    %102 = vector.extract_strided_slice %17 {offsets = [0, 0, 24], sizes = [2, 8, 8], strides = [1, 1, 1]} : vector<2x8x32xbf16> to vector<2x8x8xbf16>
    %103 = vector.extract_strided_slice %20 {offsets = [0, 0, 24], sizes = [2, 8, 8], strides = [1, 1, 1]} : vector<2x8x32xbf16> to vector<2x8x8xbf16>
    %104 = vector.extract_strided_slice %23 {offsets = [0, 0, 24], sizes = [2, 8, 8], strides = [1, 1, 1]} : vector<2x8x32xbf16> to vector<2x8x8xbf16>
    "tpu.trace_start"() <{level = 10 : i32, message = "bqd,bkd->bqk"}> : () -> ()
    %cst_37 = arith.constant dense<0.000000e+00> : vector<2x8x8xf32>
    %105 = tpu.matmul %102, %103, %cst_37 {dimension_numbers = #tpu.dot_dimension_numbers<[2], [2], [1], [1], [0, 0, 0, 1, 1, 1], [0], [0]>} : vector<2x8x8xbf16>, vector<2x8x8xbf16>, vector<2x8x8xf32> -> vector<2x8x8xf32>
    "tpu.trace_stop"() : () -> ()
    %cst_38 = arith.constant 0.353553385 : f32
    %106 = vector.broadcast %cst_38 : f32 to vector<2x8x8xf32>
    %107 = arith.mulf %105, %106 : vector<2x8x8xf32>
    %108 = vector.broadcast %29 : vector<2x1x8xf32> to vector<2x8x8xf32>
    %109 = arith.addf %107, %108 : vector<2x8x8xf32>
    %cst_39 = arith.constant dense<0xFF800000> : vector<2x8xf32>
    %110 = vector.multi_reduction <maximumf>, %109, %cst_39 [2] : vector<2x8x8xf32> to vector<2x8xf32>
    %111 = vector.shape_cast %110 : vector<2x8xf32> to vector<2x8x1xf32>
    %112 = vector.broadcast %111 : vector<2x8x1xf32> to vector<2x8x8xf32>
    %113 = arith.subf %109, %112 : vector<2x8x8xf32>
    %114 = math.exp %113 : vector<2x8x8xf32>
    %cst_40 = arith.constant dense<0.000000e+00> : vector<2x8xf32>
    %115 = vector.multi_reduction <add>, %114, %cst_40 [2] : vector<2x8x8xf32> to vector<2x8xf32>
    %116 = vector.shape_cast %115 : vector<2x8xf32> to vector<2x8x1xf32>
    %117 = tpu.reciprocal %116 {approx = true} : vector<2x8x1xf32> -> vector<2x8x1xf32>
    %118 = vector.broadcast %117 : vector<2x8x1xf32> to vector<2x8x8xf32>
    %119 = arith.mulf %114, %118 : vector<2x8x8xf32>
    %120 = arith.truncf %119 : vector<2x8x8xf32> to vector<2x8x8xbf16>
    "tpu.trace_start"() <{level = 10 : i32, message = "bqk,bkd->bqd"}> : () -> ()
    %cst_41 = arith.constant dense<0.000000e+00> : vector<2x8x8xf32>
    %121 = tpu.matmul %120, %104, %cst_41 {dimension_numbers = #tpu.dot_dimension_numbers<[2], [1], [1], [2], [0, 0, 0, 1, 1, 2], [0], [0]>} : vector<2x8x8xbf16>, vector<2x8x8xbf16>, vector<2x8x8xf32> -> vector<2x8x8xf32>
    "tpu.trace_stop"() : () -> ()
    %c0_42 = arith.constant 0 : index
    %c0_43 = arith.constant 0 : index
    %c24 = arith.constant 24 : index
    %122 = vector.load %arg13[%c0_42, %c0_43, %c24] : memref<2x8x32xf32, #tpu.memory_space<vmem>>, vector<2x8x8xf32>
    tpu.vector_store %arg13[%c0_42, %c0_43, %c24], %121 {strides = array<i32>} : memref<2x8x32xf32, #tpu.memory_space<vmem>>, vector<2x8x8xf32>,
    %c0_44 = arith.constant 0 : index
    %c0_45 = arith.constant 0 : index
    %c0_46 = arith.constant 0 : index
    %123 = vector.load %arg13[%c0_44, %c0_45, %c0_46] : memref<2x8x32xf32, #tpu.memory_space<vmem>>, vector<2x8x32xf32>
    %124 = vector.shape_cast %123 : vector<2x8x32xf32> to vector<16x32xf32>
    %125 = arith.truncf %124 : vector<16x32xf32> to vector<16x32xbf16>
    %126 = arith.index_cast %arg1 : i32 to index
    %c0_47 = arith.constant 0 : index
    %c0_48 = arith.constant 0 : index
    %127 = vector.load %arg6[%126, %c0_47, %c0_48] : memref<2x32x32xbf16, #tpu.memory_space<vmem>>, vector<1x32x32xbf16>
    %128 = vector.shape_cast %127 : vector<1x32x32xbf16> to vector<32x32xbf16>
    %cst_49 = arith.constant dense<0.000000e+00> : vector<16x32xf32>
    %129 = tpu.matmul %125, %128, %cst_49 {dimension_numbers = #tpu.dot_dimension_numbers<[1], [0], [0], [1], [0, 0, 1, 1], [], []>} : vector<16x32xbf16>, vector<32x32xbf16>, vector<16x32xf32> -> vector<16x32xf32>
    %130 = vector.broadcast %33 : vector<1x32xf32> to vector<16x32xf32>
    %131 = arith.addf %129, %130 : vector<16x32xf32>
    %132 = arith.addf %4, %131 : vector<16x32xf32>
    %cst_50 = arith.constant dense<0.000000e+00> : vector<16xf32>
    %133 = vector.multi_reduction <add>, %132, %cst_50 [1] : vector<16x32xf32> to vector<16xf32>
    %134 = vector.shape_cast %133 : vector<16xf32> to vector<16x1xf32>
    %cst_51 = arith.constant 3.200000e+01 : f32
    %135 = vector.broadcast %cst_51 : f32 to vector<16x1xf32>
    %136 = arith.divf %134, %135 : vector<16x1xf32>
    %137 = vector.broadcast %136 : vector<16x1xf32> to vector<16x32xf32>
    %138 = arith.subf %132, %137 : vector<16x32xf32>
    %139 = arith.mulf %138, %138 : vector<16x32xf32>
    %cst_52 = arith.constant dense<0.000000e+00> : vector<16xf32>
    %140 = vector.multi_reduction <add>, %139, %cst_52 [1] : vector<16x32xf32> to vector<16xf32>
    %141 = vector.shape_cast %140 : vector<16xf32> to vector<16x1xf32>
    %cst_53 = arith.constant 3.200000e+01 : f32
    %142 = vector.broadcast %cst_53 : f32 to vector<16x1xf32>
    %143 = arith.divf %141, %142 : vector<16x1xf32>
    %144 = vector.broadcast %136 : vector<16x1xf32> to vector<16x32xf32>
    %145 = arith.subf %132, %144 : vector<16x32xf32>
    %cst_54 = arith.constant 9.99999974E-6 : f32
    %146 = vector.broadcast %cst_54 : f32 to vector<16x1xf32>
    %147 = arith.addf %143, %146 : vector<16x1xf32>
    %148 = math.rsqrt %147 : vector<16x1xf32>
    %149 = vector.broadcast %148 : vector<16x1xf32> to vector<16x32xf32>
    %150 = arith.mulf %145, %149 : vector<16x32xf32>
    %151 = vector.broadcast %34 : vector<1x32xf32> to vector<16x32xf32>
    %152 = arith.mulf %150, %151 : vector<16x32xf32>
    %153 = vector.broadcast %35 : vector<1x32xf32> to vector<16x32xf32>
    %154 = arith.addf %152, %153 : vector<16x32xf32>
    %155 = arith.truncf %154 : vector<16x32xf32> to vector<16x32xbf16>
    %156 = arith.index_cast %arg1 : i32 to index
    %c0_55 = arith.constant 0 : index
    %c0_56 = arith.constant 0 : index
    %157 = vector.load %arg8[%156, %c0_55, %c0_56] : memref<2x32x64xbf16, #tpu.memory_space<vmem>>, vector<1x32x64xbf16>
    %158 = vector.shape_cast %157 : vector<1x32x64xbf16> to vector<32x64xbf16>
    %cst_57 = arith.constant dense<0.000000e+00> : vector<16x64xf32>
    %159 = tpu.matmul %155, %158, %cst_57 {dimension_numbers = #tpu.dot_dimension_numbers<[1], [0], [0], [1], [0, 0, 1, 1], [], []>} : vector<16x32xbf16>, vector<32x64xbf16>, vector<16x64xf32> -> vector<16x64xf32>
    %160 = arith.index_cast %arg1 : i32 to index
    %c0_58 = arith.constant 0 : index
    %c0_59 = arith.constant 0 : index
    %161 = vector.load %arg9[%160, %c0_58, %c0_59] : memref<2x1x64xf32, #tpu.memory_space<vmem>>, vector<1x1x64xf32>
    %162 = vector.shape_cast %161 : vector<1x1x64xf32> to vector<1x64xf32>
    %163 = vector.broadcast %162 : vector<1x64xf32> to vector<16x64xf32>
    %164 = arith.addf %159, %163 : vector<16x64xf32>
    %cst_60 = arith.constant 0.000000e+00 : f32
    %165 = vector.broadcast %cst_60 : f32 to vector<16x64xf32>
    %166 = arith.maximumf %164, %165 : vector<16x64xf32>
    %167 = arith.truncf %166 : vector<16x64xf32> to vector<16x64xbf16>
    %168 = arith.index_cast %arg1 : i32 to index
    %c0_61 = arith.constant 0 : index
    %c0_62 = arith.constant 0 : index
    %169 = vector.load %arg10[%168, %c0_61, %c0_62] : memref<2x64x32xbf16, #tpu.memory_space<vmem>>, vector<1x64x32xbf16>
    %170 = vector.shape_cast %169 : vector<1x64x32xbf16> to vector<64x32xbf16>
    %cst_63 = arith.constant dense<0.000000e+00> : vector<16x32xf32>
    %171 = tpu.matmul %167, %170, %cst_63 {dimension_numbers = #tpu.dot_dimension_numbers<[1], [0], [0], [1], [0, 0, 1, 1], [], []>} : vector<16x64xbf16>, vector<64x32xbf16>, vector<16x32xf32> -> vector<16x32xf32>
    %172 = vector.broadcast %36 : vector<1x32xf32> to vector<16x32xf32>
    %173 = arith.addf %171, %172 : vector<16x32xf32>
    %174 = arith.addf %154, %173 : vector<16x32xf32>
    %cst_64 = arith.constant dense<0.000000e+00> : vector<16xf32>
    %175 = vector.multi_reduction <add>, %174, %cst_64 [1] : vector<16x32xf32> to vector<16xf32>
    %176 = vector.shape_cast %175 : vector<16xf32> to vector<16x1xf32>
    %cst_65 = arith.constant 3.200000e+01 : f32
    %177 = vector.broadcast %cst_65 : f32 to vector<16x1xf32>
    %178 = arith.divf %176, %177 : vector<16x1xf32>
    %179 = vector.broadcast %178 : vector<16x1xf32> to vector<16x32xf32>
    %180 = arith.subf %174, %179 : vector<16x32xf32>
    %181 = arith.mulf %180, %180 : vector<16x32xf32>
    %cst_66 = arith.constant dense<0.000000e+00> : vector<16xf32>
    %182 = vector.multi_reduction <add>, %181, %cst_66 [1] : vector<16x32xf32> to vector<16xf32>
    %183 = vector.shape_cast %182 : vector<16xf32> to vector<16x1xf32>
    %cst_67 = arith.constant 3.200000e+01 : f32
    %184 = vector.broadcast %cst_67 : f32 to vector<16x1xf32>
    %185 = arith.divf %183, %184 : vector<16x1xf32>
    %186 = vector.broadcast %178 : vector<16x1xf32> to vector<16x32xf32>
    %187 = arith.subf %174, %186 : vector<16x32xf32>
    %cst_68 = arith.constant 9.99999974E-6 : f32
    %188 = vector.broadcast %cst_68 : f32 to vector<16x1xf32>
    %189 = arith.addf %185, %188 : vector<16x1xf32>
    %190 = math.rsqrt %189 : vector<16x1xf32>
    %191 = vector.broadcast %190 : vector<16x1xf32> to vector<16x32xf32>
    %192 = arith.mulf %187, %191 : vector<16x32xf32>
    %193 = vector.broadcast %37 : vector<1x32xf32> to vector<16x32xf32>
    %194 = arith.mulf %192, %193 : vector<16x32xf32>
    %195 = vector.broadcast %38 : vector<1x32xf32> to vector<16x32xf32>
    %196 = arith.addf %194, %195 : vector<16x32xf32>
    %197 = vector.shape_cast %196 : vector<16x32xf32> to vector<2x8x32xf32>
    %c0_69 = arith.constant 0 : index
    %c0_70 = arith.constant 0 : index
    %c0_71 = arith.constant 0 : index
    %198 = vector.load %arg12[%c0_69, %c0_70, %c0_71] : memref<2x8x32xf32, #tpu.memory_space<vmem>>, vector<2x8x32xf32>
    tpu.vector_store %arg12[%c0_69, %c0_70, %c0_71], %197 {strides = array<i32>} : memref<2x8x32xf32, #tpu.memory_space<vmem>>, vector<2x8x32xf32>,
    %199 = vector.shape_cast %197 : vector<2x8x32xf32> to vector<2x1x8x32xf32>
    %c0_72 = arith.constant 0 : index
    %c0_73 = arith.constant 0 : index
    %c0_74 = arith.constant 0 : index
    %c0_75 = arith.constant 0 : index
    %200 = vector.load %arg11[%c0_72, %c0_73, %c0_74, %c0_75] : memref<2x1x8x32xf32, #tpu.memory_space<vmem>>, vector<2x1x8x32xf32>
    tpu.vector_store %arg11[%c0_72, %c0_73, %c0_74, %c0_75], %199 {strides = array<i32>} : memref<2x1x8x32xf32, #tpu.memory_space<vmem>>, vector<2x1x8x32xf32>,
    return
  }
  func.func @transform_0(%arg0: i32, %arg1: i32) -> (i32, i32, i32) {
    %c0_i32 = arith.constant 0 : i32
    %c0_i32_0 = arith.constant 0 : i32
    %c0_i32_1 = arith.constant 0 : i32
    return %arg0, %c0_i32, %c0_i32_0 : i32, i32, i32
  }
  func.func @transform_1(%arg0: i32, %arg1: i32) -> (i32, i32, i32) {
    %c0_i32 = arith.constant 0 : i32
    %c0_i32_0 = arith.constant 0 : i32
    %c0_i32_1 = arith.constant 0 : i32
    return %arg0, %c0_i32, %c0_i32_0 : i32, i32, i32
  }
  func.func @transform_2(%arg0: i32, %arg1: i32) -> (i32, i32, i32) {
    %c0_i32 = arith.constant 0 : i32
    %c0_i32_0 = arith.constant 0 : i32
    %c0_i32_1 = arith.constant 0 : i32
    %c0_i32_2 = arith.constant 0 : i32
    return %c0_i32, %c0_i32_0, %c0_i32_1 : i32, i32, i32
  }
  func.func @transform_3(%arg0: i32, %arg1: i32) -> (i32, i32, i32) {
    %c0_i32 = arith.constant 0 : i32
    %c0_i32_0 = arith.constant 0 : i32
    %c0_i32_1 = arith.constant 0 : i32
    %c0_i32_2 = arith.constant 0 : i32
    return %c0_i32, %c0_i32_0, %c0_i32_1 : i32, i32, i32
  }
  func.func @transform_4(%arg0: i32, %arg1: i32) -> (i32, i32, i32) {
    %c0_i32 = arith.constant 0 : i32
    %c0_i32_0 = arith.constant 0 : i32
    %c0_i32_1 = arith.constant 0 : i32
    %c0_i32_2 = arith.constant 0 : i32
    return %c0_i32, %c0_i32_0, %c0_i32_1 : i32, i32, i32
  }
  func.func @transform_5(%arg0: i32, %arg1: i32) -> (i32, i32, i32) {
    %c0_i32 = arith.constant 0 : i32
    %c0_i32_0 = arith.constant 0 : i32
    %c0_i32_1 = arith.constant 0 : i32
    %c0_i32_2 = arith.constant 0 : i32
    return %c0_i32, %c0_i32_0, %c0_i32_1 : i32, i32, i32
  }
  func.func @transform_6(%arg0: i32, %arg1: i32) -> (i32, i32, i32) {
    %c0_i32 = arith.constant 0 : i32
    %c0_i32_0 = arith.constant 0 : i32
    %c0_i32_1 = arith.constant 0 : i32
    %c0_i32_2 = arith.constant 0 : i32
    return %c0_i32, %c0_i32_0, %c0_i32_1 : i32, i32, i32
  }
  func.func @transform_7(%arg0: i32, %arg1: i32) -> (i32, i32, i32) {
    %c0_i32 = arith.constant 0 : i32
    %c0_i32_0 = arith.constant 0 : i32
    %c0_i32_1 = arith.constant 0 : i32
    %c0_i32_2 = arith.constant 0 : i32
    return %c0_i32, %c0_i32_0, %c0_i32_1 : i32, i32, i32
  }
  func.func @transform_8(%arg0: i32, %arg1: i32) -> (i32, i32, i32) {
    %c0_i32 = arith.constant 0 : i32
    %c0_i32_0 = arith.constant 0 : i32
    %c0_i32_1 = arith.constant 0 : i32
    %c0_i32_2 = arith.constant 0 : i32
    return %c0_i32, %c0_i32_0, %c0_i32_1 : i32, i32, i32
  }
  func.func @transform_9(%arg0: i32, %arg1: i32) -> (i32, i32, i32, i32) {
    %c0_i32 = arith.constant 0 : i32
    %c0_i32_0 = arith.constant 0 : i32
    %c0_i32_1 = arith.constant 0 : i32
    return %arg0, %arg1, %c0_i32, %c0_i32_0 : i32, i32, i32, i32
  }
}

</mosaic_0001>

<bundles_post_ra>
// kernel: tpu_custom_call.1
= control target key start
LH: loop header
LB: loop body
LE: loop exit
PB: predicated region body
PF: predicated region fallthrough
CT: control target
= control target key end

     0   :  { %s2395_s0 = inlined_call_operand.hbm [shape: bf16[4,8,32], index: 0, kind: input, shape index: {}]   ;;  %s2396_s1 = inlined_call_operand.hbm [shape: f32[4,1,8], index: 1, kind: input, shape index: {}]   ;;  %s2397_s2 = inlined_call_operand.vmem [shape: bf16[2,32,96], index: 2, kind: input, shape index: {}]   ;;  %s2398_s3 = inlined_call_operand.vmem [shape: f32[2,1,96], index: 3, kind: input, shape index: {}]   ;;  %s2399_s4 = inlined_call_operand.vmem [shape: bf16[2,32,32], index: 4, kind: input, shape index: {}]   ;;  %s2400_s5 = inlined_call_operand.vmem [shape: f32[2,6,32], index: 5, kind: input, shape index: {}]   ;;  %s2401_s6 = inlined_call_operand.vmem [shape: bf16[2,32,64], index: 6, kind: input, shape index: {}]   ;;  %s2402_s7 = inlined_call_operand.hbm [shape: f32[2,1,64], index: 7, kind: input, shape index: {}]   ;;  %s2403_s8 = inlined_call_operand.vmem [shape: bf16[2,64,32], index: 8, kind: input, shape index: {}]   ;;  %s2404_s9 = inlined_call_operand.hbm [shape: f32[4,2,8,32], index: 9, kind: output, shape index: {}]  }
   0x1   :  { %2416 = sst [smem:[#allocation24_spill]] %s2395_s0 }
   0x2   :  { %2417 = sst [smem:[#allocation25_spill]] %s2397_s2 }
   0x3   :  { %2418 = sst [smem:[#allocation26_spill]] %s2399_s4 }
   0x4   :  { %2419 = sst [smem:[#allocation27_spill]] %s2400_s5 }
   0x5   :  { %2420 = sst [smem:[#allocation28_spill]] %s2401_s6 }
   0x6   :  { %2421 = sst [smem:[#allocation29_spill]] %s2402_s7 }
   0x7   :  { %2422 = sst [smem:[#allocation30_spill]] %s2403_s8 }
   0x8   :  { %2423 = sst [smem:[#allocation31_spill]] %s2404_s9 }
   0x9   :  { %14 = vsyncpa [#allocation5], 0 }
   0xa   :  { %16 = vsyncpa [#allocation5 + $0x1], 0 }
   0xb   :  { %17 = vsyncpa [#allocation8], 0 }
   0xc   :  { %19 = vsyncpa [#allocation8 + $0x1], 0 }
   0xd   :  { %20 = vsyncpa [#allocation6], 0 }
   0xe   :  { %22 = vsyncpa [#allocation6 + $0x1], 0  ;;  %s1990_s30 = smov 0   ;;  %s1992_s10 = smov 0  }
   0xf   :  { %s1994_s11 = smov 0   ;;  %s1996_s12 = smov 0  }
  0x10   :  { %s1998_s13 = smov 0   ;;  %s2000_s14 = smov 0  }
  0x11   :  { %s2002_s15 = smov 0   ;;  %s2004_s16 = smov 0  }
  0x12   :  { %s2006_s17 = smov 0   ;;  %s2008_s18 = smov 0  }
  0x13   :  { %s2010_s19 = smov 0  }
  0x14 LB: > { %2424 = sst [smem:[#allocation15_spill]] %s1875_s30  ;;  %s2044_s20 = sadd.s32 4294967295, %s1915_s19   ;;  %s1915_s19 = sphi %s2010_s19, %s28_s19   ;;  %s1911_s18 = sphi %s2008_s18, %s2466_s18   ;;  %s1907_s17 = sphi %s2006_s17, %s2457_s17   ;;  %s1903_s16 = sphi %s2004_s16, %s2465_s16   ;;  %s1899_s15 = sphi %s2002_s15, %s2456_s15   ;;  %s1895_s14 = sphi %s2000_s14, %s2464_s14   ;;  %s1891_s13 = sphi %s1998_s13, %s2463_s13   ;;  %s1887_s12 = sphi %s1996_s12, %s2462_s12   ;;  %s1883_s11 = sphi %s1994_s11, %s2461_s11   ;;  %s1879_s10 = sphi %s1992_s10, %s2460_s10   ;;  %s1875_s30 = sphi %s1990_s30, %s2459_s30  }
  0x15   : > { %2425 = sst [smem:[#allocation16_spill]] %s1895_s14  ;;  %s1404_s21 = sadd.s32 4294967294, %s1915_s19  }
  0x16   : > { %2426 = sst [smem:[#allocation17_spill]] %s1903_s16  ;;  %p60_p0 = scmp.ne.s32.totalorder %s1891_s13, %s1887_s12 }
  0x17   : > { %2427 = sst [smem:[#allocation18_spill]] %s1907_s17  ;;  %p61_p1 = scmp.eq.s32.totalorder %s2044_s20, 0 }
  0x18   : > { %p258_p2 = scmp.ne.s32.totalorder %s1883_s11, %s1879_s10  ;;  %p259_p4 = scmp.eq.s32.totalorder %s2044_s20, 3 }
  0x19   : > { %p2054_p3 = por %p61_p1, %p60_p0  ;;  %p264_p5 = scmp.ne.s32.totalorder %s1879_s10, %s1875_s30 }
  0x1a   : > { %p265_p6 = scmp.eq.s32.totalorder %s1404_s21, 3  ;;  %p2061_p7 = por %p259_p4, %p258_p2 }
  0x1b   : > { %p1405_p8 = scmp.ge.s32.totalorder %s1915_s19, 1  ;;  %p272_p10 = scmp.lt.s32.totalorder %s1915_s19, 5 }
  0x1c   : > { %s2429_s24 = scalar_select %p2061_p7, 1, 0 }
  0x1d   : > { %p2066_p9 = por %p265_p6, %p264_p5  ;;  %s2433_s7 = sld [smem:[#allocation29_spill]] }
  0x1e   : > { %2430 = sst [smem:[#allocation19_spill]] %s2429_s24  ;;  %p2074_p11 = pnand %p1405_p8, %p272_p10 }
  0x1f   : > { %s2431_s25 = scalar_select %p2066_p9, 1, 0 }
  0x20   : > { %p1521_p12 = pneg %p2074_p11  ;;  %s1917_s12 = smov [#allocation9]  }
  0x21   : > { %2432 = sst [smem:[#allocation20_spill]] %s2431_s25  ;;  %s300_s21 = sshll.u32 %s1917_s12, 4  ;;  %s301_s21 = int_to_ptr.vmem [resolvable:$true] %s300_s21 }
  0x22   : > { %p1522_p13 = pnand %p1521_p12, %p61_p1  ;;  %s2406_s26 = smov 16  }
  0x23   : > { %s298_s28 = sshll.u32 %s2433_s7, 4  ;;  %s2407_s27 = smov 1   ;;  %s299_s28 = int_to_ptr.hbm [resolvable:$true] %s298_s28 }
  0x24   : > { %1524 = dma.hbm_to_vmem [thread:$0]  (!%p1522_p13), %s299_s28, 32, %s301_s21, [#allocation8], %s2406_s26, %s2406_s26, %s2407_s27  }
  0x25   : > { %s37_s22 = sadd.s32 1, %s1907_s17  ;;  %s40_s7 = sadd.s32 1, %s1911_s18 }
  0x26   : > { %p38_p0 = scmp.ge.s32.totalorder %s37_s22, 2  ;;  %s47_s25 = sadd.s32 1, %s1895_s14 }
  0x27   : > { %p54_p2 = scmp.ne.s32.totalorder %s1895_s14, %s1891_s13  ;;  %p55_p4 = scmp.eq.s32.totalorder %s1915_s19, 0 }
  0x28   : > { %s2468_s22 = smov (%p38_p0, %s37_s22), 0  ;;  %s2470_s7 = smov (!%p38_p0, %s40_s7), %s1911_s18 }
  0x29   : > { %2435 = sst [smem:[#allocation21_spill]] %s2468_s22  ;;  %s244_s12 = ssub.s32 %s1907_s17, %s2468_s22 }
  0x2a   : > { %p42_p5 = scmp.ge.s32.totalorder %s2470_s7, 2  ;;  %p1537_p6 = scmp.lt.s32.totalorder %s1915_s19, 4 }
  0x2b   : > { %p2097_p8 = por %p55_p4, %p54_p2  ;;  %s317_s21 = sand.u32 1, %s1895_s14  }
  0x2c   : > { %s2472_s7 = smov (%p42_p5, %s2470_s7), 0  ;;  %s1408_s26 = sshll.u32 %s317_s21, 3 }
  0x2d   : > { %2437 = sst [smem:[#allocation22_spill]] %s2472_s7  ;;  %s44_s27 = ssub.s32 %s1911_s18, %s2472_s7 }
  0x2e   : > { %p45_p10 = scmp.eq.s32.totalorder %s44_s27, 0  ;;  %s245_s30 = sor.u32 %s244_s12, %s44_s27 }
  0x2f   : > { %p246_p12 = scmp.eq.s32.totalorder %s245_s30, 0  ;;  %s1491_s24 = sshll.u32 %s1911_s18, 3 }
  0x30   : > { %s2108_s22 = scalar_select %p45_p10, %s1895_s14, %s47_s25  }
  0x31   : > { %s2439_s17 = sadd.s32 1, %s1883_s11  ;;  %s2440_s0 = sld [smem:[#allocation24_spill]] }
  0x32   : > { %2438 = sst [smem:[#allocation23_spill]] %s2108_s22  ;;  %s321_s5 = scalar_lea.vmem [#allocation4], %s1408_s26 }
  0x33   : > { %s2113_s9 = scalar_select %p246_p12, %s1883_s11, %s2439_s17  }
  0x34   : > { %s329_s4 = sshll.u32 %s321_s5, 4  ;;  %p2122_p13 = pnand %p1537_p6, %p2097_p8  ;;  %s330_s4 = int_to_ptr.vmem [resolvable:$true] %s329_s4 }
  0x35   : > { %s339_s25 = sand.u32 1, %s1915_s19   ;;  %s318_s17 = scalar_lea.sflag [#allocation5], %s317_s21 }
  0x36   : > { %s1920_s27 = smov 64   ;;  %s1921_s12 = smov 4  }
  0x37   : > { %s326_s6 = scalar_lea.hbm %s2440_s0, %s1491_s24  ;;  %s1411_s8 = sshll.u32 %s317_s21, 1 }
  0x38   : > { %s327_s2 = sshll.u32 %s326_s6, 4  ;;  %s1412_s16 = sshll.u32 %s1911_s18, 1  ;;  %s328_s2 = int_to_ptr.hbm [resolvable:$true] %s327_s2 }
  0x39   : > { %1528 = dma.hbm_to_vmem [thread:$0]  (!%p2122_p13), %s328_s2, 128, %s330_s4, %s318_s17, %s1920_s27, %s1920_s27, %s1921_s12  }
  0x3a   : > { %s347_s24 = scalar_lea.hbm %s2396_s1, %s1412_s16  ;;  %s343_s26 = scalar_lea.vmem [#allocation7], %s1411_s8 }
  0x3b   : > { %s350_s28 = sshll.u32 %s343_s26, 4  ;;  %s348_s0 = sshll.u32 %s347_s24, 4  ;;  %s351_s28 = int_to_ptr.vmem [resolvable:$true] %s350_s28  ;;  %s349_s0 = int_to_ptr.hbm [resolvable:$true] %s348_s0 }
  0x3c   : > { %s340_s7 = scalar_lea.sflag [#allocation8], %s339_s25  ;;  %s2442_s22 = smov 1  }
  0x3d   : > { %s2443_s14 = smov 16   ;;  %362 = sbr.rel (%p2074_p11) target bundleno = 2064 (0x810), region = 56 }
  0x3e   : > { %1531 = dma.hbm_to_vmem [thread:$0]  (!%p2122_p13), %s349_s0, 32, %s351_s28, %s340_s7, %s2443_s14, %s2443_s14, %s2442_s22  }
  0x3f   : > { %s364_s2 = sand.u32 (!%p2074_p11), 1, %s1891_s13  }
  0x40   : > { %s1414_s4 = sshll.u32 (!%p2074_p11), %s364_s2, 3  ;;  %s365_s21 = scalar_lea.sflag (!%p2074_p11), [#allocation5], %s364_s2 }
  0x41   : > { %s368_s17 = scalar_lea.vmem (!%p2074_p11), [#allocation4], %s1414_s4 }
  0x42   : > { %1858 = dma.done.wait (%p2054_p3), %s365_s21, 128  }
  0x43   : > { %1860 = vsyncadd (%p2054_p3), %s365_s21, 4294967168  ;;  %s374_s30 = sand.u32 1, %s2044_s20   ;;  %s1415_s25 = sshll.u32 %s364_s2, 1 }
  0x44   : > { %s375_s27 = scalar_lea.sflag [#allocation8], %s374_s30  ;;  %s2146_s0 = scalar_lea.vmem [#allocation7], %s1415_s25 }
  0x45   : > { %1862 = dma.done.wait (%p2054_p3), %s375_s27, 32  }
  0x46   : > { %1864 = vsyncadd (%p2054_p3), %s375_s27, 4294967264 }
  0x47   : > { %1866 = dma.done.wait (%p61_p1), [#allocation8], 32  }
  0x48   : > { %1868 = vsyncadd (%p61_p1), [#allocation8], 4294967264  ;;  %s421_s7 = sand.u32 1, %s1879_s10   ;;  %p1418_p11 = scmp.ne.s32.totalorder %s1899_s15, 0 }
  0x49   : > { %s1417_s14 = sshll.u32 %s421_s7, 4 }
  0x4a   : > { %s2159_s22 = scalar_lea.vmem [#allocation10], %s1417_s14  ;;  %431 = sbr.rel (%p1418_p11) target bundleno = 84 (0x54), region = 72 }
  0x4f   : > { %v1508_v0 = vld [vmem:[%s368_s17] sm:$0xff]   ;;  %vm436_vm0 = vcmask 261120  }
  0x50   : > { %v1509_v1 = vunpack.c.l.bf16 %v1508_v0  ;;  %v1510_v2 = vunpack.c.h.bf16 %v1508_v0 }
  0x52   : > { %437 = vst.msk [vmem:[#allocation2] sm:$0xff] %vm436_vm0, %v1509_v1 }
  0x53   : > { %438 = vst.msk [vmem:[#allocation2 + $0x8] sm:$0xff] %vm436_vm0, %v1510_v2 }
  0x54 PF: > { %s2163_s20 = sshll.u32 %s1899_s15, 4  ;;  %s449_s12 = scalar_lea.vmem %s2398_s3, %s1899_s15  ;;  %vm466_vm1 = vcmask 261120   ;;  %vm500_vm2 = vcmask 64512   ;;  %v486_v41 = vld [vmem:[%s2146_s0] sm:$0x1]  ;;  %v1929_v42 = vmov 0.0  }
  0x55   : > { %s2444_s5 = sld [smem:[#allocation25_spill]]  ;;  %v1651_v8 = vld [vmem:[%s449_s12] ss:$0 sm:$0xff]  ;;  %s1922_s24 = smov 120   ;;  %vm488_vm3 = vcmp.gt.f32.partialorder %v486_v41, 0.5  ;;  %vm583_vm5 = vcmask 1043456  }
  0x56   : > { %s1923_s26 = smov 88   ;;  %s1924_s28 = smov 96   ;;  %v490_v43 = vsel %vm488_vm3, -1e+30, %v1929_v42  ;;  %v487_v52 = vld [vmem:[%s2146_s0 + $0x1] sm:$0x1] }
  0x57   : > { %s1925_s2 = smov 112   ;;  %s1926_s4 = smov 80   ;;  %v548_v44 = vperm.slane %v490_v43, 0  ;;  %vm489_vm4 = vcmp.gt.f32.partialorder %v487_v52, 0.5  ;;  %vm747_vm6 = vcmask 130112   ;;  %vm874_vm7 = vcmask 195712  }
  0x58   : > { %s1927_s21 = smov 72   ;;  %s1928_s17 = smov 104   ;;  %v491_v56 = vsel %vm489_vm4, -1e+30, %v1929_v42  ;;  %vm1001_vm8 = vcmask 261312   ;;  %vm1181_vm0 = vcmask 523264  }
  0x59   : > { %v2173_v5 = vld [vmem:[#allocation2] sm:$0xff]  ;;  %v549_v57 = vperm.slane %v491_v56, 0  ;;  %s1930_s30 = smov 64   ;;  %s1931_s25 = smov 56  }
  0x5a   : > { %v2175_v6 = vld [vmem:[#allocation2 + $0x8] sm:$0xff]  ;;  %s1932_s27 = smov 48   ;;  %s1933_s0 = smov 40  }
  0x5b   : > { %s444_s6 = scalar_lea.vmem %s2444_s5, %s2163_s20  ;;  %v441_v7 = vpack.c.bf16 %v2175_v6, %v2173_v5  ;;  %s1934_s14 = smov 8  }
  0x5c   : > { %v1494_v3 = vld [vmem:[%s444_s6 + $0x8] sm:$0xff]  ;;  %v1493_v4 = vld [vmem:[%s444_s6] sm:$0xff]  ;;  %s1935_s23 = smov 16   ;;  %s1936_s29 = smov 24  }
  0x5d   : > { %476 = vmatpush.bf16.msra.mxu0 %v1494_v3  ;;  %s2445_s16 = sld [smem:[#allocation26_spill]]  ;;  %s1430_s6 = sshll.u32 %s1899_s15, 3 }
  0x5e   : > { %s2449_s12 = sld [smem:[#allocation17_spill]] }
  0x61   : > { %477 = vmatpush.bf16.msra.mxu0 %v1493_v4 }
  0x63   : > { %s1008_s5 = scalar_lea.vmem %s2445_s16, %s2163_s20 }
  0x64   : > { %1429 = vmatmul.msk.bf16.vlgmr.msra.gmra.mxu0 %vm466_vm1, %v441_v7  ;;  %s1506_s8 = sshll.u32 %s2449_s12, 2 }
  0x65   : > { %s1267_s16 = sadd.s32 %s1899_s15, %s1506_s8 }
  0xe1   : > { %v479_v9 = vpop.f32.mrf.mxu0 }
  0xe2   : > { %v480_v10 = vadd.f32 %v1651_v8, %v479_v9 }
  0xe4   : > { %v484_v11 = vpack.c.bf16 %v480_v10, %v480_v10 }
  0xe6   : > { %v496_v12 = vunpack.c.l.b16 %v484_v11 }
  0xe8   : > { %v2180_v13 = vpack.c.b16 %v496_v12, %v496_v12 }
  0xe9   : > { %v481_v14 = vpop.f32.mrf.mxu0 }
  0xea   : > { %v482_v15 = vadd.f32 %v1651_v8, %v481_v14  ;;  %623 = vrot.lane.b32.xlu2 %v2180_v13, %s1922_s24  ;;  %625 = vrot.lane.b32.xlu1 %v2180_v13, %s1923_s26 }
  0xeb   : > { %498 = vrot.lane.b32.xlu0 %v2180_v13, %s1924_s28 }
  0xec   : > { %v485_v16 = vpack.c.bf16 %v482_v15, %v482_v15 }
  0xee   : > { %v521_v17 = vunpack.c.l.b16 %v485_v16 }
  0xf0   : > { %v2185_v18 = vpack.c.b16 %v521_v17, %v521_v17 }
  0xf2   : > { %646 = vrot.lane.b32.xlu2 %v2185_v18, %s1922_s24  ;;  %648 = vrot.lane.b32.xlu1 %v2185_v18, %s1923_s26  ;;  %s2450_s26 = sld [smem:[#allocation31_spill]] }
  0xf3   : > { %523 = vrot.lane.b32.xlu0 %v2185_v18, %s1924_s28  ;;  %s2446_s28 = sld [smem:[#allocation27_spill]] }
  0xfa   : > { %750 = vrot.lane.b32.xlu2 %v2180_v13, %s1925_s2  ;;  %775 = vrot.lane.b32.xlu1 %v2185_v18, %s1926_s4 }
  0xfb   : > { %752 = vrot.lane.b32.xlu0 %v2180_v13, %s1926_s4  ;;  %s1109_s4 = scalar_lea.vmem [#allocation9], %s1899_s15 }
 0x102   : > { %902 = vrot.lane.b32.xlu2 %v2185_v18, %s1927_s21  ;;  %879 = vrot.lane.b32.xlu1 %v2180_v13, %s1927_s21  ;;  %s1256_s21 = scalar_lea.sflag [#allocation6], %s421_s7 }
 0x103   : > { %773 = vrot.lane.b32.xlu0 %v2185_v18, %s1925_s2  ;;  %s493_s2 = scalar_lea.vmem %s2446_s28, %s1430_s6 }
 0x10a   : > { %900 = vrot.lane.b32.xlu1 %v2185_v18, %s1928_s17 }
 0x10b   : > { %877 = vrot.lane.b32.xlu0 %v2180_v13, %s1928_s17 }
 0x144   : > { %v624_v19 = vpop.permute.xlu2 %623 }
 0x14c   : > { %v647_v24 = vpop.permute.xlu2 %646 }
 0x154   : > { %v751_v29 = vpop.permute.xlu2 %750 }
 0x15c   : > { %v626_v20 = vpop.permute.xlu1 %625  ;;  %v903_v34 = vpop.permute.xlu2 %902 }
 0x15d   : > { %v499_v21 = vpop.permute.xlu0 %498  ;;  %v631_v22 = vsel %vm500_vm2, %v626_v20, 0  ;;  %v908_v37 = vsel %vm500_vm2, %v903_v34, 0 }
 0x15e   : > { %v505_v23 = vsel %vm500_vm2, %v499_v21, 0  ;;  %640 = vmatpush.bf16.xpose.msrb.mxu0 %v631_v22 }
 0x15f   : > { %514 = vmatpush.bf16.xpose.msra.mxu1 %v505_v23 }
 0x164   : > { %v649_v25 = vpop.permute.xlu1 %648 }
 0x165   : > { %v524_v26 = vpop.permute.xlu0 %523  ;;  %1435 = vmatmul.msk.bf16.vlgmr.msrb.gmra.mxu0 %vm500_vm2, %v624_v19  ;;  %v654_v27 = vsel %vm500_vm2, %v649_v25, 0 }
 0x166   : > { %1431 = vmatmul.msk.bf16.vlgmr.msra.gmra.mxu1 %vm500_vm2, %v484_v11  ;;  %v529_v28 = vsel %vm500_vm2, %v524_v26, 0 }
 0x167   : > { %538 = vmatpush.bf16.xpose.msra.mxu2 %v529_v28  ;;  %663 = vmatpush.bf16.xpose.msrb.mxu1 %v654_v27 }
 0x16c   : > { %v776_v30 = vpop.permute.xlu1 %775 }
 0x16d   : > { %v781_v31 = vsel %vm500_vm2, %v776_v30, 0  ;;  %v753_v32 = vpop.permute.xlu0 %752 }
 0x16e   : > { %v758_v33 = vsel %vm500_vm2, %v753_v32, 0  ;;  %1432 = vmatmul.msk.bf16.vlgmr.msra.gmra.mxu2 %vm500_vm2, %v485_v16 }
 0x16f   : > { %790 = vmatpush.bf16.xpose.msra.mxu1 %v781_v31  ;;  %767 = vmatpush.bf16.xpose.msra.mxu0 %v758_v33 }
 0x174   : > { %v880_v35 = vpop.permute.xlu1 %879 }
 0x175   : > { %v885_v36 = vsel %vm500_vm2, %v880_v35, 0  ;;  %v774_v38 = vpop.permute.xlu0 %773 }
 0x176   : > { %1436 = vmatmul.msk.bf16.vlgmr.msrb.gmra.mxu1 %vm500_vm2, %v647_v24  ;;  %1439 = vmatmul.msk.bf16.vlgmr.msra.gmra.mxu0 %vm500_vm2, %v751_v29 }
 0x177   : > { %917 = vmatpush.bf16.xpose.msrb.mxu1 %v908_v37  ;;  %894 = vmatpush.bf16.xpose.msrb.mxu0 %v885_v36 }
 0x17c   : > { %v901_v40 = vpop.permute.xlu1 %900 }
 0x17d   : > { %v878_v39 = vpop.permute.xlu0 %877 }
 0x186   : > { %1440 = vmatmul.msk.bf16.vlgmr.msra.gmra.mxu1 %vm500_vm2, %v774_v38  ;;  %1443 = vmatmul.msk.bf16.vlgmr.msrb.gmra.mxu0 %vm500_vm2, %v878_v39 }
 0x196   : > { %1444 = vmatmul.msk.bf16.vlgmr.msrb.gmra.mxu1 %vm500_vm2, %v901_v40 }
 0x1e2   : > { %v642_v45 = vpop.f32.mrf.mxu0 }
 0x1e3   : > { %v516_v46 = vpop.f32.mrf.mxu1  ;;  %v669_v47 = vmul.f32 0.35355338, %v642_v45 }
 0x1e4   : > { %v544_v48 = vmul.f32 0.35355338, %v516_v46 }
 0x1e5   : > { %v671_v49 = vadd.f32 %v669_v47, %v548_v44 }
 0x1e6   : > { %v552_v50 = vadd.f32 %v548_v44, %v544_v48 }
 0x1e7   : > { %v673_v51 = vsel %vm500_vm2, %v671_v49, -inf }
 0x1e8   : > { %674 = vmax.xlane.f32.xlu1 %v673_v51  ;;  %v554_v53 = vsel %vm500_vm2, %v552_v50, -inf }
 0x1e9   : > { %555 = vmax.xlane.f32.xlu2 %v554_v53 }
 0x1ea   : > { %v644_v54 = vpop.f32.mrf.mxu0 }
 0x1eb   : > { %v518_v55 = vpop.f32.mrf.mxu1 }
 0x1f1   : > { %v540_v58 = vpop.f32.mrf.mxu2 }
 0x1f2   : > { %v545_v59 = vmul.f32 0.35355338, %v540_v58 }
 0x1f3   : > { %v665_v60 = vpop.f32.mrf.mxu1  ;;  %v769_v61 = vpop.f32.mrf.mxu0 }
 0x1f4   : > { %v670_v62 = vmul.f32 0.35355338, %v665_v60  ;;  %v796_v63 = vmul.f32 0.35355338, %v769_v61  ;;  %v553_v0 = vadd.f32 %v549_v57, %v545_v59 }
 0x1f6   : > { %v557_v1 = vsel %vm500_vm2, %v553_v0, -inf  ;;  %v672_v2 = vadd.f32 %v670_v62, %v549_v57  ;;  %v2219_v3 = vadd.f32 %v796_v63, %v548_v44 }
 0x1f7   : > { %558 = vmax.xlane.f32.xlu0 %v557_v1 }
 0x1f8   : > { %v676_v4 = vsel %vm500_vm2, %v672_v2, -inf  ;;  %v800_v26 = vsel %vm500_vm2, %v2219_v3, -inf }
 0x1f9   : > { %677 = vmax.xlane.f32.xlu2 %v676_v4  ;;  %v542_v7 = vpop.f32.mrf.mxu2 }
 0x1fb   : > { %v667_v8 = vpop.f32.mrf.mxu1  ;;  %v771_v9 = vpop.f32.mrf.mxu0 }
 0x201   : > { %600 = vrot.lane.b32.xlu1 %v2185_v18, %s1930_s30 }
 0x203   : > { %v792_v10 = vpop.f32.mrf.mxu1  ;;  %v896_v11 = vpop.f32.mrf.mxu0 }
 0x204   : > { %v797_v19 = vmul.f32 0.35355338, %v792_v10  ;;  %v923_v23 = vmul.f32 0.35355338, %v896_v11 }
 0x206   : > { %v799_v21 = vadd.f32 %v797_v19, %v549_v57  ;;  %v925_v25 = vadd.f32 %v923_v23, %v548_v44 }
 0x208   : > { %v803_v24 = vsel %vm500_vm2, %v799_v21, -inf  ;;  %v927_v27 = vsel %vm500_vm2, %v925_v25, -inf }
 0x209   : > { %718 = vrot.lane.b32.xlu1 %v2185_v18, %s1931_s25 }
 0x20b   : > { %697 = vrot.lane.b32.xlu0 %v2180_v13, %s1931_s25  ;;  %v794_v12 = vpop.f32.mrf.mxu1  ;;  %v898_v14 = vpop.f32.mrf.mxu0 }
 0x211   : > { %578 = vrot.lane.b32.xlu2 %v2180_v13, %s1930_s30  ;;  %s2447_s30 = sld [smem:[#allocation28_spill]] }
 0x213   : > { %v919_v15 = vpop.f32.mrf.mxu1 }
 0x214   : > { %v924_v17 = vmul.f32 0.35355338, %v919_v15 }
 0x216   : > { %v926_v20 = vadd.f32 %v924_v17, %v549_v57 }
 0x217   : > { %s1104_s25 = scalar_lea.vmem %s2447_s30, %s2163_s20  ;;  %s1501_s20 = sshll.u32 %s1899_s15, 5 }
 0x218   : > { %v930_v22 = vsel %vm500_vm2, %v926_v20, -inf }
 0x21b   : > { %v921_v16 = vpop.f32.mrf.mxu1 }
 0x233   : > { %931 = vmax.xlane.f32.xlu1 %v930_v22 }
 0x235   : > { %804 = vmax.xlane.f32.xlu0 %v803_v24 }
 0x23a   : > { %801 = vmax.xlane.f32.xlu2 %v800_v26 }
 0x23d   : > { %928 = vmax.xlane.f32.xlu0 %v927_v27 }
 0x25b   : > { %v675_v28 = vpop.xlane.xlu1 %674 }
 0x25c   : > { %v679_v29 = vsub.f32 %v671_v49, %v675_v28  ;;  %v556_v30 = vpop.xlane.xlu2 %555 }
 0x25d   : > { %v560_v31 = vsub.f32 %v552_v50, %v556_v30 }
 0x25e   : > { %v681_v32 = vmul.f32 1.442695, %v679_v29 }
 0x25f   : > { %v562_v33 = vmul.f32 1.442695, %v560_v31 }
 0x260   : > { %1653 = vpow2.f32 %v681_v32 }
 0x261   : > { %1655 = vpow2.f32 %v562_v33 }
 0x266   : > { %v2231_v34 = vpop.eup %1653 }
 0x267   : > { %v2233_v35 = vpop.eup %1655  ;;  %v685_v36 = vsel %vm500_vm2, %v2231_v34, 0.0 }
 0x268   : > { %v566_v37 = vsel %vm500_vm2, %v2233_v35, 0.0  ;;  %686 = vadd.xlane.f32.xlu0 %v685_v36 }
 0x269   : > { %567 = vadd.xlane.f32.xlu1 %v566_v37 }
 0x26a   : > { %v559_v38 = vpop.xlane.xlu0 %558 }
 0x26b   : > { %v561_v39 = vsub.f32 %v553_v0, %v559_v38 }
 0x26c   : > { %v678_v40 = vpop.xlane.xlu2 %677 }
 0x26d   : > { %v564_v41 = vmul.f32 1.442695, %v561_v39  ;;  %v680_v42 = vsub.f32 %v672_v2, %v678_v40 }
 0x26f   : > { %1657 = vpow2.f32 %v564_v41  ;;  %v683_v43 = vmul.f32 1.442695, %v680_v42 }
 0x271   : > { %1659 = vpow2.f32 %v683_v43 }
 0x273   : > { %v601_v44 = vpop.permute.xlu1 %600 }
 0x274   : > { %v579_v45 = vpop.permute.xlu2 %578  ;;  %v606_v46 = vsel %vm583_vm5, %v601_v44, 0 }
 0x275   : > { %v2240_v47 = vpop.eup %1657  ;;  %v585_v48 = vsel %vm583_vm5, %v579_v45, 0 }
 0x276   : > { %594 = vmatpush.bf16.msra.mxu3 %v585_v48  ;;  %v569_v49 = vsel %vm500_vm2, %v2240_v47, 0.0 }
 0x277   : > { %v2245_v50 = vpop.eup %1659  ;;  %570 = vadd.xlane.f32.xlu0 %v569_v49 }
 0x278   : > { %v688_v51 = vsel %vm500_vm2, %v2245_v50, 0.0 }
 0x279   : > { %689 = vadd.xlane.f32.xlu2 %v688_v51 }
 0x27a   : > { %615 = vmatpush.bf16.msrb.mxu3 %v606_v46 }
 0x27b   : > { %v719_v54 = vpop.permute.xlu1 %718 }
 0x27c   : > { %v724_v23 = vsel %vm583_vm5, %v719_v54, 0 }
 0x27d   : > { %v698_v52 = vpop.permute.xlu0 %697 }
 0x27e   : > { %v703_v53 = vsel %vm583_vm5, %v698_v52, 0 }
 0x27f   : > { %712 = vmatpush.bf16.msrb.mxu2 %v703_v53 }
 0x282   : > { %845 = vrot.lane.b32.xlu1 %v2185_v18, %s1932_s27 }
 0x291   : > { %824 = vrot.lane.b32.xlu2 %v2180_v13, %s1932_s27  ;;  %s1805_s27 = scalar_lea.hbm %s2450_s26, 64 }
 0x2a6   : > { %v932_v55 = vpop.xlane.xlu1 %931 }
 0x2a7   : > { %v934_v56 = vsub.f32 %v926_v20, %v932_v55 }
 0x2a8   : > { %v805_v57 = vpop.xlane.xlu0 %804 }
 0x2a9   : > { %v807_v58 = vsub.f32 %v799_v21, %v805_v57  ;;  %v937_v60 = vmul.f32 1.442695, %v934_v56 }
 0x2ab   : > { %v810_v59 = vmul.f32 1.442695, %v807_v58 }
 0x2ad   : > { %1661 = vpow2.f32 %v810_v59  ;;  %v802_v61 = vpop.xlane.xlu2 %801 }
 0x2ae   : > { %v806_v62 = vsub.f32 %v2219_v3, %v802_v61  ;;  %1663 = vpow2.f32 %v937_v60 }
 0x2b0   : > { %v808_v63 = vmul.f32 1.442695, %v806_v62  ;;  %v929_v0 = vpop.xlane.xlu0 %928 }
 0x2b1   : > { %v933_v1 = vsub.f32 %v925_v25, %v929_v0 }
 0x2b2   : > { %1665 = vpow2.f32 %v808_v63 }
 0x2b3   : > { %v1662_v2 = vpop.eup %1661  ;;  %v935_v4 = vmul.f32 1.442695, %v933_v1 }
 0x2b4   : > { %v815_v7 = vsel %vm500_vm2, %v1662_v2, 0.0  ;;  %v2254_v8 = vpop.eup %1663 }
 0x2b5   : > { %1667 = vpow2.f32 %v935_v4  ;;  %816 = vadd.xlane.f32.xlu0 %v815_v7  ;;  %v942_v11 = vsel %vm500_vm2, %v2254_v8, 0.0 }
 0x2b8   : > { %v1666_v9 = vpop.eup %1665 }
 0x2b9   : > { %v812_v10 = vsel %vm500_vm2, %v1666_v9, 0.0 }
 0x2ba   : > { %813 = vadd.xlane.f32.xlu1 %v812_v10  ;;  %943 = vadd.xlane.f32.xlu2 %v942_v11  ;;  %v1497_v11 = vld [vmem:[%s1008_s5 + $0x8] sm:$0xff] }
 0x2bb   : > { %v1668_v3 = vpop.eup %1667  ;;  %1035 = vmatpush.bf16.msra.mxu0 %v1497_v11 }
 0x2bc   : > { %v939_v12 = vsel %vm500_vm2, %v1668_v3, 0.0 }
 0x2bd   : > { %940 = vadd.xlane.f32.xlu0 %v939_v12 }
 0x2d1   : > { %951 = vrot.lane.b32.xlu0 %v2180_v13, %s1933_s0 }
 0x2d3   : > { %972 = vrot.lane.b32.xlu1 %v2185_v18, %s1933_s0 }
 0x2db   : > { %v687_v14 = vpop.xlane.xlu0 %686 }
 0x2dc   : > { %v568_v15 = vpop.xlane.xlu1 %567  ;;  %1669 = vrcp.f32 %v687_v14 }
 0x2dd   : > { %1671 = vrcp.f32 %v568_v15 }
 0x2e2   : > { %v1670_v16 = vpop.eup %1669 }
 0x2e3   : > { %v1672_v17 = vpop.eup %1671  ;;  %v693_v19 = vmul.f32 %v1670_v16, %v2231_v34 }
 0x2e4   : > { %v574_v20 = vmul.f32 %v1672_v17, %v2233_v35 }
 0x2e5   : > { %v695_v21 = vpack.c.bf16 %v693_v19, %v693_v19 }
 0x2e6   : > { %v576_v22 = vpack.c.bf16 %v574_v20, %v574_v20 }
 0x2e7   : > { %1437 = vmatmul.msk.bf16.vlgmr.msrb.gmra.mxu2 %vm500_vm2, %v695_v21  ;;  %v2293_v21 = vld [vmem:[%s493_s2] sm:$0x3f]  ;;  %s1270_s2 = sshll.u32 %s2159_s22, 4  ;;  %s1271_s2 = int_to_ptr.vmem [resolvable:$true] %s1270_s2 }
 0x2e8   : > { %1433 = vmatmul.msk.bf16.vlgmr.msra.gmra.mxu3 %vm500_vm2, %v576_v22  ;;  %v1013_v22 = vperm.slane %v2293_v21, 0 }
 0x2e9   : > { %733 = vmatpush.bf16.msra.mxu3 %v724_v23 }
 0x2ea   : > { %v571_v13 = vpop.xlane.xlu0 %570 }
 0x2eb   : > { %1673 = vrcp.f32 %v571_v13 }
 0x2ec   : > { %v690_v18 = vpop.xlane.xlu2 %689 }
 0x2ed   : > { %1675 = vrcp.f32 %v690_v18 }
 0x2f1   : > { %v1674_v24 = vpop.eup %1673 }
 0x2f2   : > { %v575_v25 = vmul.f32 %v1674_v24, %v2240_v47 }
 0x2f3   : > { %v1676_v31 = vpop.eup %1675 }
 0x2f4   : > { %v825_v26 = vpop.permute.xlu2 %824  ;;  %v846_v28 = vpop.permute.xlu1 %845  ;;  %v577_v29 = vpack.c.bf16 %v575_v25, %v575_v25  ;;  %v694_v32 = vmul.f32 %v1676_v31, %v2245_v50 }
 0x2f5   : > { %v830_v27 = vsel %vm583_vm5, %v825_v26, 0  ;;  %v851_v30 = vsel %vm583_vm5, %v846_v28, 0 }
 0x2f6   : > { %839 = vmatpush.bf16.msra.mxu2 %v830_v27  ;;  %v696_v33 = vpack.c.bf16 %v694_v32, %v694_v32 }
 0x2f8   : > { %1434 = vmatmul.msk.bf16.vlgmr.msrb.gmra.mxu3 %vm500_vm2, %v577_v29  ;;  %v1937_v29 = vmov 32.0  }
 0x2f9   : > { %860 = vmatpush.bf16.msrb.mxu3 %v851_v30 }
 0x308   : > { %1438 = vmatmul.msk.bf16.vlgmr.msra.gmra.mxu3 %vm500_vm2, %v696_v33 }
 0x328   : > { %v817_v34 = vpop.xlane.xlu0 %816 }
 0x329   : > { %1677 = vrcp.f32 %v817_v34 }
 0x32d   : > { %v814_v35 = vpop.xlane.xlu1 %813  ;;  %v944_v41 = vpop.xlane.xlu2 %943 }
 0x32e   : > { %1679 = vrcp.f32 %v814_v35 }
 0x32f   : > { %v1678_v36 = vpop.eup %1677  ;;  %1681 = vrcp.f32 %v944_v41 }
 0x330   : > { %v821_v37 = vmul.f32 %v1678_v36, %v1662_v2  ;;  %v941_v43 = vpop.xlane.xlu0 %940 }
 0x331   : > { %1683 = vrcp.f32 %v941_v43 }
 0x332   : > { %v823_v38 = vpack.c.bf16 %v821_v37, %v821_v37  ;;  %1685 = vrcp.f32 %v1937_v29 }
 0x334   : > { %1442 = vmatmul.msk.bf16.vlgmr.msrb.gmra.mxu3 %vm500_vm2, %v823_v38  ;;  %v1680_v39 = vpop.eup %1679 }
 0x335   : > { %v820_v40 = vmul.f32 %v1680_v39, %v1666_v9  ;;  %v1682_v44 = vpop.eup %1681 }
 0x336   : > { %v948_v47 = vmul.f32 %v1682_v44, %v2254_v8  ;;  %v1500_v44 = vld [vmem:[%s1104_s25 + $0x8] sm:$0xff] }
 0x337   : > { %v822_v42 = vpack.c.bf16 %v820_v40, %v820_v40  ;;  %v1684_v45 = vpop.eup %1683  ;;  %1135 = vmatpush.bf16.msra.mxu1 %v1500_v44 }
 0x338   : > { %v947_v48 = vmul.f32 %v1684_v45, %v1668_v3  ;;  %v950_v52 = vpack.c.bf16 %v948_v47, %v948_v47  ;;  %v1496_v3 = vld [vmem:[%s1008_s5] sm:$0xff]  ;;  %v1686_v30 = vpop.eup %1685  ;;  %s1488_s5 = sshll.u32 %s1267_s16, 3 }
 0x339   : > { %1441 = vmatmul.msk.bf16.vlgmr.msra.gmra.mxu2 %vm500_vm2, %v822_v42  ;;  %1036 = vmatpush.bf16.msra.mxu0 %v1496_v3  ;;  %v1052_v31 = vmul.f32 32.0, %v1686_v30  ;;  %vm1056_vm9 = vweird.f32 %v1686_v30  ;;  %s1269_s28 = scalar_lea.hbm %s2450_s26, %s1488_s5 }
 0x33a   : > { %v949_v53 = vpack.c.bf16 %v947_v48, %v947_v48  ;;  %v1499_v48 = vld [vmem:[%s1104_s25] sm:$0xff] }
 0x33b   : > { %v1053_v32 = vsub.f32 1.0, %v1052_v31  ;;  %1136 = vmatpush.bf16.msra.mxu1 %v1499_v48 }
 0x33d   : > { %v1054_v33 = vmul.f32 %v1686_v30, %v1053_v32 }
 0x33f   : > { %v1055_v34 = vadd.f32 %v1686_v30, %v1054_v33 }
 0x343   : > { %v952_v46 = vpop.permute.xlu0 %951 }
 0x344   : > { %v957_v49 = vsel %vm583_vm5, %v952_v46, 0 }
 0x345   : > { %v973_v50 = vpop.permute.xlu1 %972  ;;  %966 = vmatpush.bf16.msrb.mxu2 %v957_v49 }
 0x346   : > { %v978_v51 = vsel %vm583_vm5, %v973_v50, 0 }
 0x347   : > { %987 = vmatpush.bf16.msra.mxu3 %v978_v51 }
 0x349   : > { %1445 = vmatmul.msk.bf16.vlgmr.msrb.gmra.mxu2 %vm500_vm2, %v949_v53 }
 0x34a   : > { %1446 = vmatmul.msk.bf16.vlgmr.msra.gmra.mxu3 %vm500_vm2, %v950_v52 }
 0x36a   : > { %v714_v54 = vpop.f32.mrf.mxu2 }
 0x36b   : > { %v596_v55 = vpop.f32.mrf.mxu3  ;;  %741 = vrot.lane.b32.xlu0 %v714_v54, %s1934_s14 }
 0x36c   : > { %621 = vst.msk [vmem:[#allocation3] sm:$0xff] %vm500_vm2, %v596_v55 }
 0x372   : > { %v716_v56 = vpop.f32.mrf.mxu2 }
 0x373   : > { %v598_v57 = vpop.f32.mrf.mxu3 }
 0x37b   : > { %v617_v58 = vpop.f32.mrf.mxu3 }
 0x37c   : > { %622 = vst.msk [vmem:[#allocation3 + $0x8] sm:$0xff] %vm500_vm2, %v617_v58 }
 0x383   : > { %v619_v59 = vpop.f32.mrf.mxu3 }
 0x38b   : > { %v735_v60 = vpop.f32.mrf.mxu3 }
 0x38c   : > { %743 = vrot.lane.b32.xlu1 %v735_v60, %s1934_s14 }
 0x393   : > { %v737_v61 = vpop.f32.mrf.mxu3 }
 0x3b7   : > { %v862_v62 = vpop.f32.mrf.mxu3 }
 0x3b8   : > { %870 = vrot.lane.b32.xlu1 %v862_v62, %s1935_s23 }
 0x3bc   : > { %v841_v63 = vpop.f32.mrf.mxu2 }
 0x3bd   : > { %868 = vrot.lane.b32.xlu0 %v841_v63, %s1935_s23  ;;  %s2448_s23 = sld [smem:[#allocation30_spill]] }
 0x3bf   : > { %v864_v0 = vpop.f32.mrf.mxu3 }
 0x3c0   : > { %v1096_v0 = vperm.slane %v2293_v21, 1 }
 0x3c4   : > { %v843_v1 = vpop.f32.mrf.mxu2 }
 0x3cc   : > { %v968_v2 = vpop.f32.mrf.mxu2 }
 0x3cd   : > { %v989_v4 = vpop.f32.mrf.mxu3  ;;  %995 = vrot.lane.b32.xlu2 %v968_v2, %s1936_s29 }
 0x3ce   : > { %997 = vrot.lane.b32.xlu0 %v989_v4, %s1936_s29  ;;  %s1147_s29 = scalar_lea.vmem %s2448_s23, %s1501_s20 }
 0x3d4   : > { %v970_v7 = vpop.f32.mrf.mxu2 }
 0x3d5   : > { %v991_v8 = vpop.f32.mrf.mxu3  ;;  %v1099_v7 = vperm.slane %v2293_v21, 2 }
 0x3dd   : > { %v742_v9 = vpop.permute.xlu0 %741 }
 0x3de   : > { %748 = vst.msk [vmem:[#allocation3] sm:$0xff] %vm747_vm6, %v742_v9 }
 0x3fe   : > { %v744_v10 = vpop.permute.xlu1 %743 }
 0x3ff   : > { %749 = vst.msk [vmem:[#allocation3 + $0x8] sm:$0xff] %vm747_vm6, %v744_v10 }
 0x427   : > { %v996_v15 = vpop.permute.xlu2 %995 }
 0x42a   : > { %v871_v12 = vpop.permute.xlu1 %870 }
 0x42b   : > { %876 = vst.msk [vmem:[#allocation3 + $0x8] sm:$0xff] %vm874_vm7, %v871_v12 }
 0x42f   : > { %v869_v14 = vpop.permute.xlu0 %868 }
 0x430   : > { %875 = vst.msk [vmem:[#allocation3] sm:$0xff] %vm874_vm7, %v869_v14  ;;  %v1505_v14 = vld [vmem:[%s1147_s29 + $0x18] sm:$0xff] }
 0x431   : > { %1002 = vst.msk [vmem:[#allocation3] sm:$0xff] %vm1001_vm8, %v996_v15  ;;  %1189 = vmatpush.bf16.msra.mxu2 %v1505_v14  ;;  %v1504_v15 = vld [vmem:[%s1147_s29 + $0x10] sm:$0xff] }
 0x435   : > { %1190 = vmatpush.bf16.msra.mxu2 %v1504_v15 }
 0x438   : > { %v1004_v17 = vld [vmem:[#allocation3] sm:$0xff] }
 0x440   : > { %v998_v16 = vpop.permute.xlu0 %997 }
 0x441   : > { %1003 = vst.msk [vmem:[#allocation3 + $0x8] sm:$0xff] %vm1001_vm8, %v998_v16  ;;  %v1503_v16 = vld [vmem:[%s1147_s29 + $0x8] sm:$0xff] }
 0x442   : > { %1191 = vmatpush.bf16.msra.mxu2 %v1503_v16 }
 0x448   : > { %v1005_v19 = vld [vmem:[#allocation3 + $0x8] sm:$0xff] }
 0x449   : > { %v1006_v20 = vpack.c.bf16 %v1005_v19, %v1004_v17  ;;  %v1502_v17 = vld [vmem:[%s1147_s29] sm:$0xff] }
 0x44a   : > { %1192 = vmatpush.bf16.msra.mxu2 %v1502_v17 }
 0x44b   : > { %1456 = vmatmul.msk.bf16.vlgmr.msra.gmra.mxu0 %vm466_vm1, %v1006_v20  ;;  %v1652_v20 = vld [vmem:[%s1109_s4] ss:$0 sm:$0xff]  ;;  %s1272_s4 = sshll.u32 %s1269_s28, 4  ;;  %s1273_s4 = int_to_ptr.hbm [resolvable:$true] %s1272_s4 }
 0x44c   : > { %s1799_s17 = sshra.s32 %s1273_s4, 4  ;;  %s1800_s17 = int_to_ptr.hbm [resolvable:$true] %s1799_s17 }
 0x44d   : > { %s1801_s30 = scalar_lea.hbm %s1800_s17, 16  ;;  %p1806_p2 = scmp.lt.s32.totalorder %s1800_s17, %s2450_s26 }
 0x44e   : > { %p1802_p1 = scmp.ne.s32.totalorder %s1800_s17, %s1801_s30  ;;  %p1807_p4 = scmp.lt.s32.totalorder %s1805_s27, %s1801_s30 }
 0x450   : > { %p1803_p3 = pnand %p1802_p1, %p2061_p7  ;;  %p1808_p5 = por %p1807_p4, %p1806_p2 }
 0x452   : > { %p1804_p0 = pneg %p1803_p3 }
 0x454   : > { %p1809_p6 = pnand %p1808_p5, %p1804_p0 }
 0x4c8   : > { %v1038_v23 = vpop.f32.mrf.mxu0 }
 0x4c9   : > { %v1039_v13 = vadd.f32 %v1038_v23, %v1013_v22 }
 0x4cb   : > { %v1043_v18 = vadd.f32 %v1039_v13, %v2173_v5  ;;  %v2300_v5 = vsel %vm1056_vm9, %v1686_v30, %v1055_v34 }
 0x4cd   : > { %v1045_v24 = vsel %vm466_vm1, %v1043_v18, 0.0 }
 0x4ce   : > { %1046 = vadd.xlane.f32.xlu1 %v1045_v24 }
 0x4d0   : > { %v1040_v25 = vpop.f32.mrf.mxu0 }
 0x4d1   : > { %v1041_v26 = vadd.f32 %v1040_v25, %v1013_v22 }
 0x4d3   : > { %v1044_v27 = vadd.f32 %v1041_v26, %v2175_v6  ;;  %v1156_v26 = vperm.slane %v2293_v21, 3 }
 0x4d5   : > { %v1048_v28 = vsel %vm466_vm1, %v1044_v27, 0.0 }
 0x4d6   : > { %1049 = vadd.xlane.f32.xlu0 %v1048_v28 }
 0x541   : > { %v1047_v35 = vpop.xlane.xlu1 %1046 }
 0x542   : > { %v1058_v36 = vmul.f32 %v2300_v5, %v1047_v35 }
 0x544   : > { %v1060_v37 = vsub.f32 %v1043_v18, %v1058_v36 }
 0x546   : > { %v1062_v6 = vmul.f32 %v1060_v37, %v1060_v37 }
 0x548   : > { %v1064_v38 = vsel %vm466_vm1, %v1062_v6, 0.0 }
 0x549   : > { %v1050_v39 = vpop.xlane.xlu0 %1049  ;;  %1065 = vadd.xlane.f32.xlu2 %v1064_v38 }
 0x54a   : > { %v1059_v40 = vmul.f32 %v2300_v5, %v1050_v39 }
 0x54c   : > { %v1061_v41 = vsub.f32 %v1044_v27, %v1059_v40 }
 0x54e   : > { %v1063_v42 = vmul.f32 %v1061_v41, %v1061_v41 }
 0x550   : > { %v1067_v43 = vsel %vm466_vm1, %v1063_v42, 0.0 }
 0x551   : > { %1068 = vadd.xlane.f32.xlu1 %v1067_v43 }
 0x5bc   : > { %v1066_v45 = vpop.xlane.xlu2 %1065 }
 0x5bd   : > { %v1070_v46 = vmul.f32 %v1066_v45, %v2300_v5 }
 0x5bf   : > { %v1072_v47 = vadd.f32 1e-05, %v1070_v46 }
 0x5c1   : > { %1687 = vrsqrt.f32 %v1072_v47  ;;  %vm1080_vm11 = vweird.f32 %v1072_v47 }
 0x5c4   : > { %v1069_v49 = vpop.xlane.xlu1 %1068 }
 0x5c5   : > { %v1071_v50 = vmul.f32 %v1069_v49, %v2300_v5 }
 0x5c7   : > { %v1688_v51 = vpop.eup %1687  ;;  %v1073_v52 = vadd.f32 1e-05, %v1071_v50 }
 0x5c8   : > { %v1075_v53 = vmul.f32 %v1688_v51, %v1072_v47  ;;  %vm1081_vm10 = vweird.f32 %v1688_v51 }
 0x5c9   : > { %1689 = vrsqrt.f32 %v1073_v52  ;;  %vm1082_vm12 = vmor %vm1080_vm11, %vm1081_vm10  ;;  %vm1090_vm14 = vweird.f32 %v1073_v52 }
 0x5ca   : > { %v1076_v54 = vmul.f32 %v1688_v51, %v1075_v53 }
 0x5cc   : > { %v1077_v55 = vmul.f32 0.5, %v1076_v54 }
 0x5ce   : > { %v1078_v56 = vsub.f32 1.5, %v1077_v55 }
 0x5cf   : > { %v1690_v57 = vpop.eup %1689 }
 0x5d0   : > { %v1079_v58 = vmul.f32 %v1688_v51, %v1078_v56  ;;  %v1085_v59 = vmul.f32 %v1690_v57, %v1073_v52  ;;  %vm1091_vm13 = vweird.f32 %v1690_v57 }
 0x5d1   : > { %vm1092_vm15 = vmor %vm1090_vm14, %vm1091_vm13 }
 0x5d2   : > { %v1086_v60 = vmul.f32 %v1690_v57, %v1085_v59  ;;  %v1083_v61 = vsel %vm1082_vm12, %v1688_v51, %v1079_v58  ;;  %v1245_v58 = vperm.slane %v2293_v21, 4 }
 0x5d3   : > { %v1094_v1 = vmul.f32 %v1083_v61, %v1060_v37 }
 0x5d4   : > { %v1087_v62 = vmul.f32 0.5, %v1086_v60  ;;  %v1248_v60 = vperm.slane %v2293_v21, 5 }
 0x5d5   : > { %v1097_v8 = vmul.f32 %v1096_v0, %v1094_v1 }
 0x5d6   : > { %v1088_v63 = vsub.f32 1.5, %v1087_v62 }
 0x5d7   : > { %v1100_v11 = vadd.f32 %v1099_v7, %v1097_v8 }
 0x5d8   : > { %v1089_v2 = vmul.f32 %v1690_v57, %v1088_v63 }
 0x5da   : > { %v1093_v4 = vsel %vm1092_vm15, %v1690_v57, %v1089_v2 }
 0x5db   : > { %v1095_v9 = vmul.f32 %v1093_v4, %v1061_v41 }
 0x5dd   : > { %v1098_v10 = vmul.f32 %v1096_v0, %v1095_v9 }
 0x5df   : > { %v1101_v3 = vadd.f32 %v1099_v7, %v1098_v10 }
 0x5e1   : > { %v1102_v12 = vpack.c.bf16 %v1101_v3, %v1100_v11 }
 0x5e3   : > { %1466 = vmatmul.msk.bf16.vlgmr.msra.gmra.mxu1 %vm466_vm1, %v1102_v12 }
 0x660   : > { %v1138_v19 = vpop.f32.mrf.mxu1 }
 0x661   : > { %v1139_v22 = vadd.f32 %v1652_v20, %v1138_v19 }
 0x663   : > { %v1143_v18 = vmax.f32 %v1139_v22, 0.0 }
 0x668   : > { %v1140_v23 = vpop.f32.mrf.mxu1 }
 0x669   : > { %v1141_v13 = vadd.f32 %v1652_v20, %v1140_v23 }
 0x66b   : > { %v1144_v24 = vmax.f32 %v1141_v13, 0.0 }
 0x66d   : > { %v1145_v25 = vpack.c.bf16 %v1144_v24, %v1143_v18 }
 0x66f   : > { %1484 = vmatmul.msk.bf16.vlgmr.msra.gmra.mxu2 %vm1181_vm0, %v1145_v25 }
 0x6f2   : > { %v1194_v27 = vpop.f32.mrf.mxu2 }
 0x6f3   : > { %v1195_v28 = vadd.f32 %v1194_v27, %v1156_v26 }
 0x6f5   : > { %v1199_v29 = vadd.f32 %v1195_v28, %v1100_v11 }
 0x6f7   : > { %v1201_v30 = vsel %vm466_vm1, %v1199_v29, 0.0 }
 0x6f8   : > { %1202 = vadd.xlane.f32.xlu0 %v1201_v30 }
 0x6fa   : > { %v1196_v31 = vpop.f32.mrf.mxu2 }
 0x6fb   : > { %v1197_v32 = vadd.f32 %v1196_v31, %v1156_v26 }
 0x6fd   : > { %v1200_v33 = vadd.f32 %v1197_v32, %v1101_v3 }
 0x6ff   : > { %v1204_v34 = vsel %vm466_vm1, %v1200_v33, 0.0 }
 0x700   : > { %1205 = vadd.xlane.f32.xlu1 %v1204_v34 }
 0x76b   : > { %v1203_v35 = vpop.xlane.xlu0 %1202 }
 0x76c   : > { %v1207_v36 = vmul.f32 %v1203_v35, %v2300_v5 }
 0x76e   : > { %v1209_v37 = vsub.f32 %v1199_v29, %v1207_v36 }
 0x770   : > { %v1211_v6 = vmul.f32 %v1209_v37, %v1209_v37 }
 0x772   : > { %v1213_v38 = vsel %vm466_vm1, %v1211_v6, 0.0 }
 0x773   : > { %v1206_v39 = vpop.xlane.xlu1 %1205  ;;  %1214 = vadd.xlane.f32.xlu0 %v1213_v38 }
 0x774   : > { %v1208_v40 = vmul.f32 %v1206_v39, %v2300_v5 }
 0x776   : > { %v1210_v41 = vsub.f32 %v1200_v33, %v1208_v40 }
 0x778   : > { %v1212_v42 = vmul.f32 %v1210_v41, %v1210_v41 }
 0x77a   : > { %v1216_v43 = vsel %vm466_vm1, %v1212_v42, 0.0 }
 0x77b   : > { %1217 = vadd.xlane.f32.xlu1 %v1216_v43 }
 0x7e6   : > { %v1215_v44 = vpop.xlane.xlu0 %1214 }
 0x7e7   : > { %v1219_v45 = vmul.f32 %v1215_v44, %v2300_v5 }
 0x7e9   : > { %v1221_v46 = vadd.f32 1e-05, %v1219_v45 }
 0x7eb   : > { %1691 = vrsqrt.f32 %v1221_v46  ;;  %vm1229_vm3 = vweird.f32 %v1221_v46 }
 0x7ee   : > { %v1218_v47 = vpop.xlane.xlu1 %1217 }
 0x7ef   : > { %v1220_v48 = vmul.f32 %v1218_v47, %v2300_v5 }
 0x7f1   : > { %v1692_v49 = vpop.eup %1691  ;;  %v1222_v50 = vadd.f32 1e-05, %v1220_v48 }
 0x7f2   : > { %v1224_v51 = vmul.f32 %v1692_v49, %v1221_v46  ;;  %vm1230_vm2 = vweird.f32 %v1692_v49 }
 0x7f3   : > { %1693 = vrsqrt.f32 %v1222_v50  ;;  %vm1231_vm4 = vmor %vm1229_vm3, %vm1230_vm2  ;;  %vm1239_vm6 = vweird.f32 %v1222_v50 }
 0x7f4   : > { %v1225_v52 = vmul.f32 %v1692_v49, %v1224_v51 }
 0x7f6   : > { %v1226_v53 = vmul.f32 0.5, %v1225_v52 }
 0x7f8   : > { %v1227_v54 = vsub.f32 1.5, %v1226_v53 }
 0x7f9   : > { %v1694_v55 = vpop.eup %1693 }
 0x7fa   : > { %v1228_v56 = vmul.f32 %v1692_v49, %v1227_v54  ;;  %v1234_v57 = vmul.f32 %v1694_v55, %v1222_v50  ;;  %vm1240_vm5 = vweird.f32 %v1694_v55 }
 0x7fb   : > { %vm1241_vm7 = vmor %vm1239_vm6, %vm1240_vm5 }
 0x7fc   : > { %v1232_v59 = vsel %vm1231_vm4, %v1692_v49, %v1228_v56  ;;  %v1235_v5 = vmul.f32 %v1694_v55, %v1234_v57 }
 0x7fd   : > { %v1243_v61 = vmul.f32 %v1232_v59, %v1209_v37 }
 0x7fe   : > { %v1236_v62 = vmul.f32 0.5, %v1235_v5 }
 0x7ff   : > { %v1246_v63 = vmul.f32 %v1245_v58, %v1243_v61 }
 0x800   : > { %v1237_v0 = vsub.f32 1.5, %v1236_v62 }
 0x801   : > { %v1249_v1 = vadd.f32 %v1248_v60, %v1246_v63 }
 0x802   : > { %v1238_v2 = vmul.f32 %v1694_v55, %v1237_v0 }
 0x803   : > { %1251 = vst.msk [vmem:[#allocation2] sm:$0xff] %vm466_vm1, %v1249_v1 }
 0x804   : > { %1253 = vst.msk [vmem:[%s2159_s22] sm:$0xff] %vm466_vm1, %v1249_v1  ;;  %v1242_v21 = vsel %vm1241_vm7, %v1694_v55, %v1238_v2 }
 0x805   : > { %v1244_v4 = vmul.f32 %v1242_v21, %v1210_v41 }
 0x807   : > { %v1247_v7 = vmul.f32 %v1245_v58, %v1244_v4 }
 0x809   : > { %v1250_v8 = vadd.f32 %v1248_v60, %v1247_v7 }
 0x80b   : > { %1252 = vst.msk [vmem:[#allocation2 + $0x8] sm:$0xff] %vm466_vm1, %v1250_v8 }
 0x80c   : > { %1254 = vst.msk [vmem:[%s2159_s22 + $0x8] sm:$0xff] %vm466_vm1, %v1250_v8 }
 0x80d   : > { %1812 = shalt.err (!%p1809_p6)
}
 0x80e   : > { %s1938_s7 = smov 128   ;;  %s1939_s22 = smov 256  }
 0x80f   : > { %1519 = dma.vmem_to_hbm [thread:$0]  (%p2061_p7), %s1271_s2, 256, %s1273_s4, %s1256_s21, %s1938_s7, %s1939_s22, %s1934_s14  }
 0x810 PF: > { %s2452_s29 = sld [smem:[#allocation15_spill]]  ;;  %p1539_p8 = scmp.ge.s32.totalorder %s1915_s19, 2 }
 0x812   : > { %p1533_p10 = pnand %p1539_p8, %p2066_p9 }
 0x814   : > { %p1534_p12 = pneg %p1533_p10 }
 0x816   : > { %s1287_s8 = sand.u32 1, %s2452_s29  }
 0x817   : > { %s1288_s16 = scalar_lea.sflag [#allocation6], %s1287_s8 }
 0x818   : > { %1870 = dma.done.wait (%p1534_p12), %s1288_s16, 256  }
 0x819   : > { %1872 = vsyncadd (%p1534_p12), %s1288_s16, 4294967040  ;;  %s28_s19 = sadd.s32 1, %s1915_s19   ;;  %s2454_s14 = sld [smem:[#allocation16_spill]] }
 0x81a   : > { %p25_p13 = scmp.ge.s32.totalorder %s28_s19, 6   ;;  %s2455_s5 = sld [smem:[#allocation23_spill]] }
 0x81b   : > { %s2456_s15 = sld [smem:[#allocation18_spill]]  ;;  %s2459_s30 = smov %s1879_s10 }
 0x81c   : > { %s2457_s17 = sld [smem:[#allocation21_spill]]  ;;  %s2460_s10 = smov %s1883_s11 }
 0x81d   : > { %s2458_s6 = sld [smem:[#allocation22_spill]]  ;;  %s2461_s11 = smov %s2113_s9 }
 0x81e   : > { %s2462_s12 = smov %s1891_s13  ;;  %s2465_s16 = smov %s1911_s18 }
 0x81f   : > { %s2463_s13 = smov %s2454_s14  ;;  %27 = sbr.rel (!%p25_p13) target bundleno = 20 (0x14), region = 129 }
 0x820   : > { %s2464_s14 = smov %s2455_s5 }
 0x823   : > { %s2466_s18 = smov %s2458_s6 }
 0x824   :  { %1294 = vsyncpa [#allocation5], 1 }
 0x825   :  { %1296 = vsyncpa [#allocation5 + $0x1], 1 }
 0x826   :  { %1297 = vsyncpa [#allocation8], 1 }
 0x827   :  { %1299 = vsyncpa [#allocation8 + $0x1], 1 }
 0x828   :  { %1300 = vsyncpa [#allocation6], 1 }
 0x829   :  { %1302 = vsyncpa [#allocation6 + $0x1], 1 }

</bundles_post_ra>
